<compile_context>
chip_gen: v7x
topology: tpu7x:2x2x1
jax: 0.10.0
libtpu: 0.0.40
codegen_flags: <defaults>
</compile_context>

<pallas_src>
import functools

import jax
import jax.numpy as jnp
from jax.experimental import pallas as pl
from jax.experimental.pallas import tpu as pltpu

IN_DIM = 28 * 28      # 784
H1 = 256
H2 = 512
OUT_DIM = 28 * 28     # 784


def _round_up(x, m):
    return ((x + m - 1) // m) * m


def _generator_kernel(x_ref, w1_ref, b1_ref, w2_ref, b2_ref, w3_ref, b3_ref, o_ref):
    """Fused 3-layer MLP: sigmoid(relu(relu(x@W1+b1)@W2+b2)@W3+b3)."""
    x = x_ref[...]  # (tb, 784) bf16

    # Layer 1: Linear(784 -> 256) + ReLU
    h1 = jnp.dot(x, w1_ref[...], preferred_element_type=jnp.float32) + b1_ref[...]
    h1 = jnp.maximum(h1, 0.0).astype(jnp.bfloat16)

    # Layer 2: Linear(256 -> 512) + ReLU
    h2 = jnp.dot(h1, w2_ref[...], preferred_element_type=jnp.float32) + b2_ref[...]
    h2 = jnp.maximum(h2, 0.0).astype(jnp.bfloat16)

    # Layer 3: Linear(512 -> 784) + Sigmoid
    z = jnp.dot(h2, w3_ref[...], preferred_element_type=jnp.float32) + b3_ref[...]

    # Numerically stable sigmoid; divide goes to the (otherwise idle) EUP slot.
    t = jnp.exp(-jnp.abs(z))
    s = pl.reciprocal(1.0 + t, approx=True)       # sigmoid(|z|) in (0.5, 1]
    o_ref[...] = jnp.where(z >= 0.0, s, 1.0 - s)


def init_params(key):
    """PyTorch nn.Linear-style init (U(-1/sqrt(fan_in), 1/sqrt(fan_in))), f32,
    weights stored pre-transposed as (in_features, out_features)."""
    ks = jax.random.split(key, 6)

    def lin(kw, kb, fan_in, fan_out):
        bound = 1.0 / jnp.sqrt(fan_in)
        w_t = jax.random.uniform(kw, (fan_in, fan_out), jnp.float32, -bound, bound)
        b = jax.random.uniform(kb, (1, fan_out), jnp.float32, -bound, bound)
        return w_t, b

    w1t, b1 = lin(ks[0], ks[1], IN_DIM, H1)
    w2t, b2 = lin(ks[2], ks[3], H1, H2)
    w3t, b3 = lin(ks[4], ks[5], H2, OUT_DIM)
    return {"w1t": w1t, "b1": b1, "w2t": w2t, "b2": b2, "w3t": w3t, "b3": b3}


def prepare_params(params):
    """Kernel-ready params: bf16 weights (no feature padding), f32 biases."""
    return {
        "w1t": params["w1t"].astype(jnp.bfloat16),   # (784, 256)
        "b1": params["b1"].astype(jnp.float32),      # (1, 256)
        "w2t": params["w2t"].astype(jnp.bfloat16),   # (256, 512)
        "b2": params["b2"].astype(jnp.float32),      # (1, 512)
        "w3t": params["w3t"].astype(jnp.bfloat16),   # (512, 784)
        "b3": params["b3"].astype(jnp.float32),      # (1, 784)
    }


def _pick_tb(B):
    """Batch tile: multiple of 16 (bf16 sublane packing).  Single grid step for
    B < 512; for larger batches aim for >=4 steps (>=2 per v7x TensorCore) while
    keeping tb in [256, 512] so the MXU M tile stays full on v6e/v7x."""
    if B < 512:
        return _round_up(max(B, 16), 16)
    return min(512, max(256, _round_up(pl.cdiv(B, 4), 256)))


def generator_forward(x, prepared, *, vmem_limit_bytes=None):
    """x: (B, 784) float (any float dtype).  Returns (B, 784) f32."""
    B, D = x.shape
    assert D == IN_DIM

    # bf16 activations into the kernel (fuses with x's producer under jit).
    x_bf = x.astype(jnp.bfloat16)

    tb = _pick_tb(B)
    grid = (pl.cdiv(B, tb),)

    flops = 2 * B * (IN_DIM * H1 + H1 * H2 + H2 * OUT_DIM)
    bytes_accessed = (
        B * IN_DIM * 2                                   # x (bf16 in)
        + B * OUT_DIM * 4                                # out (f32)
        + 2 * (IN_DIM * H1 + H1 * H2 + H2 * OUT_DIM)     # bf16 weights
        + 4 * (H1 + H2 + OUT_DIM)                        # f32 biases
    )
    cost = pl.CostEstimate(
        flops=flops,
        transcendentals=B * OUT_DIM,                     # sigmoid exp
        bytes_accessed=bytes_accessed,
    )

    out = pl.pallas_call(
        _generator_kernel,
        out_shape=jax.ShapeDtypeStruct((B, OUT_DIM), jnp.float32),
        grid_spec=pltpu.PrefetchScalarGridSpec(
            num_scalar_prefetch=0,
            grid=grid,
            in_specs=[
                pl.BlockSpec((tb, IN_DIM), lambda i: (i, 0)),    # x tile over batch
                pl.BlockSpec((IN_DIM, H1), lambda i: (0, 0)),    # W1^T (resident)
                pl.BlockSpec((1, H1), lambda i: (0, 0)),         # b1
                pl.BlockSpec((H1, H2), lambda i: (0, 0)),        # W2^T (resident)
                pl.BlockSpec((1, H2), lambda i: (0, 0)),         # b2
                pl.BlockSpec((H2, OUT_DIM), lambda i: (0, 0)),   # W3^T (resident)
                pl.BlockSpec((1, OUT_DIM), lambda i: (0, 0)),    # b3
            ],
            out_specs=pl.BlockSpec((tb, OUT_DIM), lambda i: (i, 0)),
        ),
        compiler_params=pltpu.CompilerParams(
            dimension_semantics=("parallel",),
            vmem_limit_bytes=vmem_limit_bytes,  # ~12 MiB at tb=512; default limits suffice
        ),
        cost_estimate=cost,
    )(x_bf, prepared["w1t"], prepared["b1"], prepared["w2t"], prepared["b2"],
      prepared["w3t"], prepared["b3"])

    return out


def generator_reference_f32(x, params):
    """Pure-f32 JAX reference (exact PyTorch semantics)."""
    h1 = jnp.maximum(x @ params["w1t"] + params["b1"], 0.0)
    h2 = jnp.maximum(h1 @ params["w2t"] + params["b2"], 0.0)
    return jax.nn.sigmoid(h2 @ params["w3t"] + params["b3"])


def generator_reference_mixed(x, params):
    """Pure-JAX reference with the same bf16-input / f32-accumulate mixed precision."""
    xb = x.astype(jnp.bfloat16)
    h1 = jnp.dot(xb, params["w1t"].astype(jnp.bfloat16),
                 preferred_element_type=jnp.float32) + params["b1"]
    h1 = jnp.maximum(h1, 0.0).astype(jnp.bfloat16)
    h2 = jnp.dot(h1, params["w2t"].astype(jnp.bfloat16),
                 preferred_element_type=jnp.float32) + params["b2"]
    h2 = jnp.maximum(h2, 0.0).astype(jnp.bfloat16)
    z = jnp.dot(h2, params["w3t"].astype(jnp.bfloat16),
                preferred_element_type=jnp.float32) + params["b3"]
    return jax.nn.sigmoid(z)


if __name__ == "__main__":
    key = jax.random.PRNGKey(0)
    k_params, k_x = jax.random.split(key)

    params = init_params(k_params)
    prepared = prepare_params(params)

    B = 8
    x = jax.random.normal(k_x, (B, IN_DIM), dtype=jnp.float32)

    fwd = jax.jit(functools.partial(generator_forward, prepared=prepared))
    out = jax.block_until_ready(fwd(x))
    assert out.shape == (B, OUT_DIM), out.shape

    ref_mixed = generator_reference_mixed(x, params)
    ref_f32 = generator_reference_f32(x, params)

    # Tight check vs. the same mixed-precision math (headroom for approx recip);
    # loose check vs. pure f32 (bf16 weight quantization, sigmoid outputs in [0,1]).
    err_mixed = float(jnp.max(jnp.abs(out - ref_mixed)))
    err_f32 = float(jnp.max(jnp.abs(out - ref_f32)))
    assert err_mixed < 5e-3, err_mixed
    assert err_f32 < 5e-2, err_f32

    print("KERNEL_OK")
</pallas_src>

<mosaic_0001>
module attributes {stable_mosaic.version = 11 : i64} {
  func.func @_generator_kernel(%arg0: i32, %arg1: memref<16x784xbf16, #tpu.memory_space<vmem>>, %arg2: memref<784x256xbf16, #tpu.memory_space<vmem>>, %arg3: memref<1x256xf32, #tpu.memory_space<vmem>>, %arg4: memref<256x512xbf16, #tpu.memory_space<vmem>>, %arg5: memref<1x512xf32, #tpu.memory_space<vmem>>, %arg6: memref<512x784xbf16, #tpu.memory_space<vmem>>, %arg7: memref<1x784xf32, #tpu.memory_space<vmem>>, %arg8: memref<16x784xf32, #tpu.memory_space<vmem>>) attributes {dimension_semantics = [#tpu.dimension_semantics<parallel>], iteration_bounds = array<i64: 1>, scalar_prefetch = 0 : i64, scratch_operands = 0 : i64, tpu.core_type = #tpu.core_type<tc>, window_params = [{transform_indices = @transform_0, window_bounds = array<i64: 16, 784>}, {pipeline_mode = #tpu.pipeline_mode<synchronous>, transform_indices = @transform_1, window_bounds = array<i64: 784, 256>}, {pipeline_mode = #tpu.pipeline_mode<synchronous>, transform_indices = @transform_2, window_bounds = array<i64: 1, 256>}, {pipeline_mode = #tpu.pipeline_mode<synchronous>, transform_indices = @transform_3, window_bounds = array<i64: 256, 512>}, {pipeline_mode = #tpu.pipeline_mode<synchronous>, transform_indices = @transform_4, window_bounds = array<i64: 1, 512>}, {pipeline_mode = #tpu.pipeline_mode<synchronous>, transform_indices = @transform_5, window_bounds = array<i64: 512, 784>}, {pipeline_mode = #tpu.pipeline_mode<synchronous>, transform_indices = @transform_6, window_bounds = array<i64: 1, 784>}, {transform_indices = @transform_7, window_bounds = array<i64: 16, 784>}]} {
    %c0 = arith.constant 0 : index
    %c0_0 = arith.constant 0 : index
    %0 = vector.load %arg1[%c0, %c0_0] : memref<16x784xbf16, #tpu.memory_space<vmem>>, vector<16x784xbf16>
    %c0_1 = arith.constant 0 : index
    %c0_2 = arith.constant 0 : index
    %1 = vector.load %arg2[%c0_1, %c0_2] : memref<784x256xbf16, #tpu.memory_space<vmem>>, vector<784x256xbf16>
    %cst = arith.constant dense<0.000000e+00> : vector<16x256xf32>
    %2 = tpu.matmul %0, %1, %cst {dimension_numbers = #tpu.dot_dimension_numbers<[1], [0], [0], [1], [0, 0, 1, 1], [], []>} : vector<16x784xbf16>, vector<784x256xbf16>, vector<16x256xf32> -> vector<16x256xf32>
    %c0_3 = arith.constant 0 : index
    %c0_4 = arith.constant 0 : index
    %3 = vector.load %arg3[%c0_3, %c0_4] : memref<1x256xf32, #tpu.memory_space<vmem>>, vector<1x256xf32>
    %4 = vector.broadcast %3 : vector<1x256xf32> to vector<16x256xf32>
    %5 = arith.addf %2, %4 : vector<16x256xf32>
    %cst_5 = arith.constant 0.000000e+00 : f32
    %6 = vector.broadcast %cst_5 : f32 to vector<16x256xf32>
    %7 = arith.maximumf %5, %6 : vector<16x256xf32>
    %8 = arith.truncf %7 : vector<16x256xf32> to vector<16x256xbf16>
    %c0_6 = arith.constant 0 : index
    %c0_7 = arith.constant 0 : index
    %9 = vector.load %arg4[%c0_6, %c0_7] : memref<256x512xbf16, #tpu.memory_space<vmem>>, vector<256x512xbf16>
    %cst_8 = arith.constant dense<0.000000e+00> : vector<16x512xf32>
    %10 = tpu.matmul %8, %9, %cst_8 {dimension_numbers = #tpu.dot_dimension_numbers<[1], [0], [0], [1], [0, 0, 1, 1], [], []>} : vector<16x256xbf16>, vector<256x512xbf16>, vector<16x512xf32> -> vector<16x512xf32>
    %c0_9 = arith.constant 0 : index
    %c0_10 = arith.constant 0 : index
    %11 = vector.load %arg5[%c0_9, %c0_10] : memref<1x512xf32, #tpu.memory_space<vmem>>, vector<1x512xf32>
    %12 = vector.broadcast %11 : vector<1x512xf32> to vector<16x512xf32>
    %13 = arith.addf %10, %12 : vector<16x512xf32>
    %cst_11 = arith.constant 0.000000e+00 : f32
    %14 = vector.broadcast %cst_11 : f32 to vector<16x512xf32>
    %15 = arith.maximumf %13, %14 : vector<16x512xf32>
    %16 = arith.truncf %15 : vector<16x512xf32> to vector<16x512xbf16>
    %c0_12 = arith.constant 0 : index
    %c0_13 = arith.constant 0 : index
    %17 = vector.load %arg6[%c0_12, %c0_13] : memref<512x784xbf16, #tpu.memory_space<vmem>>, vector<512x784xbf16>
    %cst_14 = arith.constant dense<0.000000e+00> : vector<16x784xf32>
    %18 = tpu.matmul %16, %17, %cst_14 {dimension_numbers = #tpu.dot_dimension_numbers<[1], [0], [0], [1], [0, 0, 1, 1], [], []>} : vector<16x512xbf16>, vector<512x784xbf16>, vector<16x784xf32> -> vector<16x784xf32>
    %c0_15 = arith.constant 0 : index
    %c0_16 = arith.constant 0 : index
    %19 = vector.load %arg7[%c0_15, %c0_16] : memref<1x784xf32, #tpu.memory_space<vmem>>, vector<1x784xf32>
    %20 = vector.broadcast %19 : vector<1x784xf32> to vector<16x784xf32>
    %21 = arith.addf %18, %20 : vector<16x784xf32>
    %22 = math.absf %21 : vector<16x784xf32>
    %cst_17 = arith.constant 0.000000e+00 : f32
    %23 = vector.broadcast %cst_17 : f32 to vector<16x784xf32>
    %24 = arith.subf %23, %22 : vector<16x784xf32>
    %25 = math.exp %24 : vector<16x784xf32>
    %cst_18 = arith.constant 1.000000e+00 : f32
    %26 = vector.broadcast %cst_18 : f32 to vector<16x784xf32>
    %27 = arith.addf %26, %25 : vector<16x784xf32>
    %28 = tpu.reciprocal %27 {approx = true} : vector<16x784xf32> -> vector<16x784xf32>
    %cst_19 = arith.constant 0.000000e+00 : f32
    %29 = vector.broadcast %cst_19 : f32 to vector<16x784xf32>
    %30 = arith.cmpf oge, %21, %29 : vector<16x784xf32>
    %cst_20 = arith.constant 1.000000e+00 : f32
    %31 = vector.broadcast %cst_20 : f32 to vector<16x784xf32>
    %32 = arith.subf %31, %28 : vector<16x784xf32>
    %33 = arith.select %30, %28, %32 : vector<16x784xi1>, vector<16x784xf32>
    %c0_21 = arith.constant 0 : index
    %c0_22 = arith.constant 0 : index
    %34 = vector.load %arg8[%c0_21, %c0_22] : memref<16x784xf32, #tpu.memory_space<vmem>>, vector<16x784xf32>
    tpu.vector_store %arg8[%c0_21, %c0_22], %33 {strides = array<i32>} : memref<16x784xf32, #tpu.memory_space<vmem>>, vector<16x784xf32>,
    return
  }
  func.func @transform_0(%arg0: i32) -> (i32, i32) {
    %c0_i32 = arith.constant 0 : i32
    %c0_i32_0 = arith.constant 0 : i32
    return %arg0, %c0_i32 : i32, i32
  }
  func.func @transform_1(%arg0: i32) -> (i32, i32) {
    %c0_i32 = arith.constant 0 : i32
    %c0_i32_0 = arith.constant 0 : i32
    %c0_i32_1 = arith.constant 0 : i32
    return %c0_i32, %c0_i32_0 : i32, i32
  }
  func.func @transform_2(%arg0: i32) -> (i32, i32) {
    %c0_i32 = arith.constant 0 : i32
    %c0_i32_0 = arith.constant 0 : i32
    %c0_i32_1 = arith.constant 0 : i32
    return %c0_i32, %c0_i32_0 : i32, i32
  }
  func.func @transform_3(%arg0: i32) -> (i32, i32) {
    %c0_i32 = arith.constant 0 : i32
    %c0_i32_0 = arith.constant 0 : i32
    %c0_i32_1 = arith.constant 0 : i32
    return %c0_i32, %c0_i32_0 : i32, i32
  }
  func.func @transform_4(%arg0: i32) -> (i32, i32) {
    %c0_i32 = arith.constant 0 : i32
    %c0_i32_0 = arith.constant 0 : i32
    %c0_i32_1 = arith.constant 0 : i32
    return %c0_i32, %c0_i32_0 : i32, i32
  }
  func.func @transform_5(%arg0: i32) -> (i32, i32) {
    %c0_i32 = arith.constant 0 : i32
    %c0_i32_0 = arith.constant 0 : i32
    %c0_i32_1 = arith.constant 0 : i32
    return %c0_i32, %c0_i32_0 : i32, i32
  }
  func.func @transform_6(%arg0: i32) -> (i32, i32) {
    %c0_i32 = arith.constant 0 : i32
    %c0_i32_0 = arith.constant 0 : i32
    %c0_i32_1 = arith.constant 0 : i32
    return %c0_i32, %c0_i32_0 : i32, i32
  }
  func.func @transform_7(%arg0: i32) -> (i32, i32) {
    %c0_i32 = arith.constant 0 : i32
    %c0_i32_0 = arith.constant 0 : i32
    return %arg0, %c0_i32 : i32, i32
  }
}

</mosaic_0001>

<bundles_post_ra>
// kernel: generator_forward.1
= control target key start
LH: loop header
LB: loop body
LE: loop exit
PB: predicated region body
PF: predicated region fallthrough
CT: control target
= control target key end

     0   :  { %12 = vsyncpa [#allocation3], 0  ;;  %v4433_v38 = vmov 0   ;;  %vm671_vm0 = vcmask 130048   ;;  %s5794_s0 = inlined_call_operand.vmem [shape: bf16[8,784], index: 0, kind: input, shape index: {}]   ;;  %s5795_s1 = inlined_call_operand.vmem [shape: bf16[784,256], index: 1, kind: input, shape index: {}]   ;;  %s5796_s2 = inlined_call_operand.vmem [shape: f32[1,256], index: 2, kind: input, shape index: {}]   ;;  %s5797_s3 = inlined_call_operand.vmem [shape: bf16[256,512], index: 3, kind: input, shape index: {}]   ;;  %s5798_s4 = inlined_call_operand.vmem [shape: f32[1,512], index: 4, kind: input, shape index: {}]   ;;  %s5799_s5 = inlined_call_operand.vmem [shape: bf16[512,784], index: 5, kind: input, shape index: {}]   ;;  %s5800_s6 = inlined_call_operand.vmem [shape: f32[1,784], index: 6, kind: input, shape index: {}]   ;;  %s5801_s7 = inlined_call_operand.hbm [shape: f32[8,784], index: 7, kind: output, shape index: {}]  }
   0x1   :  { %v3780_v0 = vld [vmem:[%s5795_s1 + $0x4] ss:$8 sps:$4 sm:$0xff]   ;;  %v3782_v1 = vld [vmem:[%s5795_s1] ss:$8 sps:$4 sm:$0xff]   ;;  %v3783_v2 = vld [vmem:[%s5795_s1 + $0x14] ss:$8 sps:$4 sm:$0xff]   ;;  %836 = vmatprep.mubr.bf16.mxu1 %v4433_v38 }
   0x2   :  { %675 = vmatprep.subr.bf16.mxu0 %v3780_v0  ;;  %v3785_v3 = vld [vmem:[%s5795_s1 + $0x10] ss:$8 sps:$4 sm:$0xff]   ;;  %v3786_v4 = vld [vmem:[%s5795_s1 + $0x24] ss:$8 sps:$4 sm:$0xff]   ;;  %v3788_v5 = vld [vmem:[%s5795_s1 + $0x20] ss:$8 sps:$4 sm:$0xff]  }
   0x3   :  { %676 = vmatpush1.bf16.msra.mxu0 %v3782_v1  ;;  %v3789_v6 = vld [vmem:[%s5795_s1 + $0x34] ss:$8 sps:$4 sm:$0xff]   ;;  %v3791_v7 = vld [vmem:[%s5795_s1 + $0x30] ss:$8 sps:$4 sm:$0xff]   ;;  %v3792_v8 = vld [vmem:[%s5795_s1 + $0x44] ss:$8 sps:$4 sm:$0xff]  }
   0x4   :  { %677 = vmatprep.subr.bf16.mxu0 %v3783_v2  ;;  %v3794_v9 = vld [vmem:[%s5795_s1 + $0x40] ss:$8 sps:$4 sm:$0xff]   ;;  %v3795_v10 = vld [vmem:[%s5795_s1 + $0x54] ss:$8 sps:$4 sm:$0xff]   ;;  %v3797_v11 = vld [vmem:[%s5795_s1 + $0x50] ss:$8 sps:$4 sm:$0xff]  }
   0x5   :  { %v3798_v12 = vld [vmem:[%s5795_s1 + $0x64] ss:$8 sps:$4 sm:$0xff]   ;;  %v3800_v14 = vld [vmem:[%s5795_s1 + $0x60] ss:$8 sps:$4 sm:$0xff]   ;;  %v3801_v15 = vld [vmem:[%s5795_s1 + $0x74] ss:$8 sps:$4 sm:$0xff]  }
   0x6   :  { %v3830_v13 = vld [vmem:[%s5794_s0 + $0x4] ss:$28 sps:$4 sm:$0xff]   ;;  %v3803_v16 = vld [vmem:[%s5795_s1 + $0x70] ss:$8 sps:$4 sm:$0xff]   ;;  %v3807_v19 = vld [vmem:[%s5795_s1 + $0x94] ss:$8 sps:$4 sm:$0xff]  }
   0x7   :  { %678 = vmatpush1.bf16.msra.mxu0 %v3785_v3  ;;  %707 = vmatprep.mubr.bf16.mxu0 %v3830_v13  ;;  %v3804_v17 = vld [vmem:[%s5795_s1 + $0x84] ss:$8 sps:$4 sm:$0xff]   ;;  %v3806_v18 = vld [vmem:[%s5795_s1 + $0x80] ss:$8 sps:$4 sm:$0xff]   ;;  %v3809_v20 = vld [vmem:[%s5795_s1 + $0x90] ss:$8 sps:$4 sm:$0xff]  }
   0x8   :  { %679 = vmatprep.subr.bf16.mxu0 %v3786_v4  ;;  %v3810_v21 = vld [vmem:[%s5795_s1 + $0xa4] ss:$8 sps:$4 sm:$0xff]   ;;  %v3812_v22 = vld [vmem:[%s5795_s1 + $0xa0] ss:$8 sps:$4 sm:$0xff]   ;;  %v3813_v23 = vld [vmem:[%s5795_s1 + $0xb4] ss:$8 sps:$4 sm:$0xff]  }
   0x9   :  { %v3815_v24 = vld [vmem:[%s5795_s1 + $0xb0] ss:$8 sps:$4 sm:$0xff]   ;;  %v3816_v25 = vld [vmem:[%s5795_s1 + $0xc4] ss:$8 sps:$4 sm:$0xff]   ;;  %v3818_v26 = vld [vmem:[%s5795_s1 + $0xc0] ss:$8 sps:$4 sm:$0xff]  }
   0xa   :  { %v3819_v27 = vld [vmem:[%s5795_s1 + $0xd4] ss:$8 sps:$4 sm:$0xff]   ;;  %v3821_v28 = vld [vmem:[%s5795_s1 + $0xd0] ss:$8 sps:$4 sm:$0xff]   ;;  %v3822_v29 = vld [vmem:[%s5795_s1 + $0xe4] ss:$8 sps:$4 sm:$0xff]  }
   0xb   :  { %680 = vmatpush1.bf16.msra.mxu0 %v3788_v5  ;;  %v3824_v30 = vld [vmem:[%s5795_s1 + $0xe0] ss:$8 sps:$4 sm:$0xff]   ;;  %v3825_v31 = vld [vmem:[%s5795_s1 + $0xf4] ss:$8 sps:$4 sm:$0xff]   ;;  %v3827_v32 = vld [vmem:[%s5795_s1 + $0xf0] ss:$8 sps:$4 sm:$0xff]  }
   0xc   :  { %681 = vmatprep.subr.bf16.mxu0 %v3789_v6  ;;  %v3833_v33 = vld [vmem:[%s5795_s1 + $0x104] ss:$8 sps:$4 sm:$0xff]   ;;  %v3828_v34 = vld [vmem:[%s5794_s0] ss:$28 sps:$4 sm:$0xff]   ;;  %v3834_v40 = vld [vmem:[%s5795_s1 + $0x110] ss:$8 sps:$4 sm:$0xff]  }
   0xd   :  { %v3831_v35 = vld [vmem:[%s5795_s1 + $0x100] ss:$8 sps:$4 sm:$0xff]   ;;  %v3836_v37 = vld [vmem:[%s5795_s1 + $0x114] ss:$8 sps:$4 sm:$0xff]   ;;  %v3927_v39 = vld [vmem:[%s5795_s1 + $0x304] ss:$8 sps:$4 sm:$0xff]  }
   0xe   :  { %v3881_v36 = vld [vmem:[%s5794_s0 + $0xc] ss:$28 sps:$4 sm:$0xff]   ;;  %804 = vmatprep.subr.bf16.mxu1 %v3927_v39  ;;  %v3936_v44 = vld [vmem:[%s5794_s0 + $0x18] ss:$28 sps:$4 sm:$0xff]   ;;  %v3937_v45 = vld [vmem:[%s5797_s3] ss:$16 sps:$4 sm:$0xff]  }
   0xf   :  { %682 = vmatpush1.bf16.msra.mxu0 %v3791_v7  ;;  %v3932_v41 = vld [vmem:[%s5795_s1 + $0x300] ss:$8 sps:$4 sm:$0xff]   ;;  %v3839_v42 = vld [vmem:[%s5795_s1 + $0x124] ss:$8 sps:$4 sm:$0xff]   ;;  %v3842_v47 = vld [vmem:[%s5795_s1 + $0x134] ss:$8 sps:$4 sm:$0xff]  }
  0x10   :  { %683 = vmatprep.subr.bf16.mxu0 %v3792_v8  ;;  %v3837_v43 = vld [vmem:[%s5795_s1 + $0x120] ss:$8 sps:$4 sm:$0xff]   ;;  %805 = vmatpush1.bf16.msra.mxu1 %v3932_v41  ;;  %v3939_v46 = vld [vmem:[%s5797_s3 + $0x4] ss:$16 sps:$4 sm:$0xff]   ;;  %v3840_v49 = vld [vmem:[%s5795_s1 + $0x130] ss:$8 sps:$4 sm:$0xff]  }
  0x11   :  { %v3942_v48 = vld [vmem:[%s5797_s3 + $0x24] ss:$16 sps:$4 sm:$0xff]   ;;  %1259 = vmatprep.subr.bf16.mxu1 %v3939_v46  ;;  %v3940_v50 = vld [vmem:[%s5797_s3 + $0x20] ss:$16 sps:$4 sm:$0xff]  }
  0x12   :  { %v3945_v51 = vld [vmem:[%s5797_s3 + $0x44] ss:$16 sps:$4 sm:$0xff]   ;;  %v3843_v53 = vld [vmem:[%s5795_s1 + $0x140] ss:$8 sps:$4 sm:$0xff]   ;;  %v3846_v57 = vld [vmem:[%s5795_s1 + $0x150] ss:$8 sps:$4 sm:$0xff]  }
  0x13   :  { %684 = vmatpush1.bf16.msra.mxu0 %v3794_v9  ;;  %3403 = vmatmul.mubr.msk.bf16.vlgmr.msra.gmra.mrb[0].mxu1 %vm671_vm0, %v3936_v44  ;;  %v3845_v52 = vld [vmem:[%s5795_s1 + $0x144] ss:$8 sps:$4 sm:$0xff]   ;;  %v3943_v54 = vld [vmem:[%s5797_s3 + $0x40] ss:$16 sps:$4 sm:$0xff]   ;;  %v3848_v56 = vld [vmem:[%s5795_s1 + $0x154] ss:$8 sps:$4 sm:$0xff]  }
  0x14   :  { %685 = vmatprep.subr.bf16.mxu0 %v3795_v10  ;;  %1260 = vmatpush1.bf16.msra.mxu1 %v3937_v45  ;;  %v3948_v55 = vld [vmem:[%s5797_s3 + $0x64] ss:$16 sps:$4 sm:$0xff]   ;;  %v3946_v58 = vld [vmem:[%s5797_s3 + $0x60] ss:$16 sps:$4 sm:$0xff]  }
  0x15   :  { %1261 = vmatprep.subr.bf16.mxu1 %v3942_v48  ;;  %v3951_v59 = vld [vmem:[%s5797_s3 + $0x84] ss:$16 sps:$4 sm:$0xff]   ;;  %v3849_v61 = vld [vmem:[%s5795_s1 + $0x160] ss:$8 sps:$4 sm:$0xff]   ;;  %v3852_v2 = vld [vmem:[%s5795_s1 + $0x170] ss:$8 sps:$4 sm:$0xff]  }
  0x16   :  { %v3851_v60 = vld [vmem:[%s5795_s1 + $0x164] ss:$8 sps:$4 sm:$0xff]   ;;  %v3854_v62 = vld [vmem:[%s5795_s1 + $0x174] ss:$8 sps:$4 sm:$0xff]   ;;  %v3949_v63 = vld [vmem:[%s5797_s3 + $0x80] ss:$16 sps:$4 sm:$0xff]  }
  0x17   :  { %686 = vmatpush1.bf16.msra.mxu0 %v3797_v11  ;;  %v3954_v0 = vld [vmem:[%s5797_s3 + $0xa4] ss:$16 sps:$4 sm:$0xff]   ;;  %v3952_v1 = vld [vmem:[%s5797_s3 + $0xa0] ss:$16 sps:$4 sm:$0xff]  }
  0x18   :  { %687 = vmatprep.subr.bf16.mxu0 %v3798_v12  ;;  %1262 = vmatpush1.bf16.msra.mxu1 %v3940_v50  ;;  %v3957_v3 = vld [vmem:[%s5797_s3 + $0xc4] ss:$16 sps:$4 sm:$0xff]   ;;  %v3955_v5 = vld [vmem:[%s5797_s3 + $0xc0] ss:$16 sps:$4 sm:$0xff]  }
  0x19   :  { %1263 = vmatprep.subr.bf16.mxu1 %v3945_v51  ;;  %v3857_v4 = vld [vmem:[%s5795_s1 + $0x184] ss:$8 sps:$4 sm:$0xff]   ;;  %v3855_v6 = vld [vmem:[%s5795_s1 + $0x180] ss:$8 sps:$4 sm:$0xff]   ;;  %v3860_v8 = vld [vmem:[%s5795_s1 + $0x194] ss:$8 sps:$4 sm:$0xff]  }
  0x1a   :  { %v3960_v7 = vld [vmem:[%s5797_s3 + $0xe4] ss:$16 sps:$4 sm:$0xff]   ;;  %v3958_v9 = vld [vmem:[%s5797_s3 + $0xe0] ss:$16 sps:$4 sm:$0xff]  }
  0x1b   :  { %688 = vmatpush1.bf16.msra.mxu0 %v3800_v14  ;;  %v3858_v10 = vld [vmem:[%s5795_s1 + $0x190] ss:$8 sps:$4 sm:$0xff]   ;;  %v3963_v11 = vld [vmem:[%s5797_s3 + $0x104] ss:$16 sps:$4 sm:$0xff]   ;;  %v3861_v14 = vld [vmem:[%s5795_s1 + $0x1a0] ss:$8 sps:$4 sm:$0xff]  }
  0x1c   :  { %689 = vmatprep.subr.bf16.mxu0 %v3801_v15  ;;  %1264 = vmatpush1.bf16.msra.mxu1 %v3943_v54  ;;  %v3863_v12 = vld [vmem:[%s5795_s1 + $0x1a4] ss:$8 sps:$4 sm:$0xff]   ;;  %v3961_v13 = vld [vmem:[%s5797_s3 + $0x100] ss:$16 sps:$4 sm:$0xff]   ;;  %v3893_v41 = vld [vmem:[%s5795_s1 + $0x234] ss:$8 sps:$4 sm:$0xff]  }
  0x1d   :  { %1265 = vmatprep.subr.bf16.mxu1 %v3948_v55  ;;  %v3966_v15 = vld [vmem:[%s5797_s3 + $0x124] ss:$16 sps:$4 sm:$0xff]   ;;  %v3885_v38 = vld [vmem:[%s5795_s1 + $0x210] ss:$8 sps:$4 sm:$0xff]   ;;  %v3894_v44 = vld [vmem:[%s5795_s1 + $0x240] ss:$8 sps:$4 sm:$0xff]  }
  0x1e   :  { %v3890_v39 = vld [vmem:[%s5795_s1 + $0x224] ss:$8 sps:$4 sm:$0xff]   ;;  %v3899_v45 = vld [vmem:[%s5795_s1 + $0x254] ss:$8 sps:$4 sm:$0xff]   ;;  %v3897_v46 = vld [vmem:[%s5795_s1 + $0x250] ss:$8 sps:$4 sm:$0xff]  }
  0x1f   :  { %690 = vmatpush1.bf16.msra.mxu0 %v3803_v16  ;;  %v3866_v16 = vld [vmem:[%s5795_s1 + $0x1b4] ss:$8 sps:$4 sm:$0xff]   ;;  %v3900_v48 = vld [vmem:[%s5795_s1 + $0x260] ss:$8 sps:$4 sm:$0xff]   ;;  %v3903_v50 = vld [vmem:[%s5795_s1 + $0x270] ss:$8 sps:$4 sm:$0xff]  }
  0x20   :  { %691 = vmatprep.subr.bf16.mxu0 %v3804_v17  ;;  %1266 = vmatpush1.bf16.msra.mxu1 %v3946_v58  ;;  %v3964_v17 = vld [vmem:[%s5797_s3 + $0x120] ss:$16 sps:$4 sm:$0xff]   ;;  %v3908_v51 = vld [vmem:[%s5795_s1 + $0x284] ss:$8 sps:$4 sm:$0xff]  }
  0x21   :  { %1267 = vmatprep.subr.bf16.mxu1 %v3951_v59  ;;  %v3909_v54 = vld [vmem:[%s5795_s1 + $0x290] ss:$8 sps:$4 sm:$0xff]   ;;  %v3914_v55 = vld [vmem:[%s5795_s1 + $0x2a4] ss:$8 sps:$4 sm:$0xff]  }
  0x22   :  { %v3915_v58 = vld [vmem:[%s5795_s1 + $0x2b0] ss:$8 sps:$4 sm:$0xff]   ;;  %v3920_v59 = vld [vmem:[%s5795_s1 + $0x2c4] ss:$8 sps:$4 sm:$0xff]  }
  0x23   :  { %692 = vmatpush1.bf16.msra.mxu0 %v3806_v18  ;;  %v3864_v18 = vld [vmem:[%s5795_s1 + $0x1b0] ss:$8 sps:$4 sm:$0xff]  }
  0x24   :  { %693 = vmatprep.subr.bf16.mxu0 %v3807_v19  ;;  %1268 = vmatpush1.bf16.msra.mxu1 %v3949_v63  ;;  %v3969_v19 = vld [vmem:[%s5797_s3 + $0x144] ss:$16 sps:$4 sm:$0xff]  }
  0x25   :  { %1269 = vmatprep.subr.bf16.mxu1 %v3954_v0  ;;  %v3926_v63 = vld [vmem:[%s5795_s1 + $0x2e4] ss:$8 sps:$4 sm:$0xff]   ;;  %v3924_v0 = vld [vmem:[%s5795_s1 + $0x2e0] ss:$8 sps:$4 sm:$0xff]  }
  0x27   :  { %694 = vmatpush1.bf16.msra.mxu0 %v3809_v20  ;;  %v3869_v20 = vld [vmem:[%s5795_s1 + $0x1c4] ss:$8 sps:$4 sm:$0xff]  }
  0x28   :  { %695 = vmatprep.subr.bf16.mxu0 %v3810_v21  ;;  %1270 = vmatpush1.bf16.msra.mxu1 %v3952_v1  ;;  %v3967_v21 = vld [vmem:[%s5797_s3 + $0x140] ss:$16 sps:$4 sm:$0xff]   ;;  %v3931_v1 = vld [vmem:[%s5795_s1 + $0x2f4] ss:$8 sps:$4 sm:$0xff]  }
  0x29   :  { %1271 = vmatprep.subr.bf16.mxu1 %v3957_v3  ;;  %v3933_v3 = vld [vmem:[%s5794_s0 + $0x10] ss:$28 sps:$4 sm:$0xff]  }
  0x2b   :  { %696 = vmatpush1.bf16.msra.mxu0 %v3812_v22  ;;  %v3867_v22 = vld [vmem:[%s5795_s1 + $0x1c0] ss:$8 sps:$4 sm:$0xff]  }
  0x2c   :  { %697 = vmatprep.subr.bf16.mxu0 %v3813_v23  ;;  %1272 = vmatpush1.bf16.msra.mxu1 %v3955_v5  ;;  %v3972_v23 = vld [vmem:[%s5797_s3 + $0x164] ss:$16 sps:$4 sm:$0xff]   ;;  %v3976_v5 = vld [vmem:[%s5797_s3 + $0x1a0] ss:$16 sps:$4 sm:$0xff]  }
  0x2d   :  { %1273 = vmatprep.subr.bf16.mxu1 %v3960_v7  ;;  %v3979_v7 = vld [vmem:[%s5797_s3 + $0x1c0] ss:$16 sps:$4 sm:$0xff]  }
  0x2f   :  { %698 = vmatpush1.bf16.msra.mxu0 %v3815_v24  ;;  %v3872_v24 = vld [vmem:[%s5795_s1 + $0x1d4] ss:$8 sps:$4 sm:$0xff]  }
  0x30   :  { %699 = vmatprep.subr.bf16.mxu0 %v3816_v25  ;;  %1274 = vmatpush1.bf16.msra.mxu1 %v3958_v9  ;;  %v3970_v25 = vld [vmem:[%s5797_s3 + $0x160] ss:$16 sps:$4 sm:$0xff]   ;;  %v3984_v9 = vld [vmem:[%s5797_s3 + $0x1e4] ss:$16 sps:$4 sm:$0xff]  }
  0x31   :  { %1275 = vmatprep.subr.bf16.mxu1 %v3963_v11  ;;  %v3982_v11 = vld [vmem:[%s5797_s3 + $0x1e0] ss:$16 sps:$4 sm:$0xff]  }
  0x33   :  { %700 = vmatpush1.bf16.msra.mxu0 %v3818_v26  ;;  %v3870_v26 = vld [vmem:[%s5795_s1 + $0x1d0] ss:$8 sps:$4 sm:$0xff]  }
  0x34   :  { %701 = vmatprep.subr.bf16.mxu0 %v3819_v27  ;;  %1276 = vmatpush1.bf16.msra.mxu1 %v3961_v13  ;;  %v3975_v27 = vld [vmem:[%s5797_s3 + $0x184] ss:$16 sps:$4 sm:$0xff]  }
  0x35   :  { %1277 = vmatprep.subr.bf16.mxu1 %v3966_v15  ;;  %v4036_v15 = vld [vmem:[%s5799_s5 + $0x8] ss:$28 sps:$4 sm:$0xff]  }
  0x37   :  { %702 = vmatpush1.bf16.msra.mxu0 %v3821_v28  ;;  %v3875_v28 = vld [vmem:[%s5795_s1 + $0x1e4] ss:$8 sps:$4 sm:$0xff]  }
  0x38   :  { %703 = vmatprep.subr.bf16.mxu0 %v3822_v29  ;;  %1278 = vmatpush1.bf16.msra.mxu1 %v3964_v17  ;;  %v3973_v29 = vld [vmem:[%s5797_s3 + $0x180] ss:$16 sps:$4 sm:$0xff]  }
  0x39   :  { %1279 = vmatprep.subr.bf16.mxu1 %v3969_v19  ;;  %v4044_v17 = vld [vmem:[%s5799_s5 + $0x44] ss:$28 sps:$4 sm:$0xff]   ;;  %v4050_v19 = vld [vmem:[%s5799_s5 + $0x7c] ss:$28 sps:$4 sm:$0xff]  }
  0x3b   :  { %704 = vmatpush1.bf16.msra.mxu0 %v3824_v30  ;;  %v3873_v30 = vld [vmem:[%s5795_s1 + $0x1e0] ss:$8 sps:$4 sm:$0xff]  }
  0x3c   :  { %705 = vmatprep.subr.bf16.mxu0 %v3825_v31  ;;  %1280 = vmatpush1.bf16.msra.mxu1 %v3967_v21  ;;  %v3878_v31 = vld [vmem:[%s5795_s1 + $0x1f4] ss:$8 sps:$4 sm:$0xff]  }
  0x3d   :  { %1281 = vmatprep.subr.bf16.mxu1 %v3972_v23  ;;  %v4056_v21 = vld [vmem:[%s5799_s5 + $0xb4] ss:$28 sps:$4 sm:$0xff]   ;;  %v4062_v23 = vld [vmem:[%s5799_s5 + $0xec] ss:$28 sps:$4 sm:$0xff]  }
  0x3f   :  { %706 = vmatpush1.bf16.msra.mxu0 %v3827_v32  ;;  %v3876_v32 = vld [vmem:[%s5795_s1 + $0x1f0] ss:$8 sps:$4 sm:$0xff]  }
  0x40   :  { %718 = vmatprep.subr.bf16.mxu0 %v3833_v33  ;;  %1282 = vmatpush1.bf16.msra.mxu1 %v3970_v25  ;;  %v3884_v33 = vld [vmem:[%s5795_s1 + $0x204] ss:$8 sps:$4 sm:$0xff]  }
  0x41   :  { %1283 = vmatprep.subr.bf16.mxu1 %v3975_v27  ;;  %v4068_v25 = vld [vmem:[%s5799_s5 + $0x124] ss:$28 sps:$4 sm:$0xff]   ;;  %v4074_v27 = vld [vmem:[%s5799_s5 + $0x15c] ss:$28 sps:$4 sm:$0xff]  }
  0x42   :  { %708 = vmatmul.mubr.bf16.vlgmr.msra.gmra.mrb[0].mxu0 %v3828_v34  ;;  %v3879_v34 = vld [vmem:[%s5794_s0 + $0x8] ss:$28 sps:$4 sm:$0xff]  }
  0x43   :  { %719 = vmatpush1.bf16.msra.mxu0 %v3831_v35  ;;  %750 = vmatprep.mubr.bf16.mxu0 %v3881_v36  ;;  %v3882_v35 = vld [vmem:[%s5795_s1 + $0x200] ss:$8 sps:$4 sm:$0xff]   ;;  %v3935_v36 = vld [vmem:[%s5794_s0 + $0x14] ss:$28 sps:$4 sm:$0xff]  }
  0x44   :  { %720 = vmatprep.subr.bf16.mxu0 %v3836_v37  ;;  %1284 = vmatpush1.bf16.msra.mxu1 %v3973_v29  ;;  %v3887_v37 = vld [vmem:[%s5795_s1 + $0x214] ss:$8 sps:$4 sm:$0xff]  }
  0x45   :  { %v4080_v29 = vld [vmem:[%s5799_s5 + $0x194] ss:$28 sps:$4 sm:$0xff]  }
  0x47   :  { %721 = vmatpush1.bf16.msra.mxu0 %v3834_v40  ;;  %v3888_v40 = vld [vmem:[%s5795_s1 + $0x220] ss:$8 sps:$4 sm:$0xff]  }
  0x48   :  { %722 = vmatprep.subr.bf16.mxu0 %v3839_v42  ;;  %v3891_v42 = vld [vmem:[%s5795_s1 + $0x230] ss:$8 sps:$4 sm:$0xff]  }
  0x4b   :  { %723 = vmatpush1.bf16.msra.mxu0 %v3837_v43  ;;  %v3896_v43 = vld [vmem:[%s5795_s1 + $0x244] ss:$8 sps:$4 sm:$0xff]  }
  0x4c   :  { %724 = vmatprep.subr.bf16.mxu0 %v3842_v47  ;;  %v3902_v47 = vld [vmem:[%s5795_s1 + $0x264] ss:$8 sps:$4 sm:$0xff]  }
  0x4f   :  { %725 = vmatpush1.bf16.msra.mxu0 %v3840_v49  ;;  %v3905_v49 = vld [vmem:[%s5795_s1 + $0x274] ss:$8 sps:$4 sm:$0xff]  }
  0x50   :  { %726 = vmatprep.subr.bf16.mxu0 %v3845_v52  ;;  %v3906_v52 = vld [vmem:[%s5795_s1 + $0x280] ss:$8 sps:$4 sm:$0xff]  }
  0x53   :  { %727 = vmatpush1.bf16.msra.mxu0 %v3843_v53  ;;  %v3911_v53 = vld [vmem:[%s5795_s1 + $0x294] ss:$8 sps:$4 sm:$0xff]  }
  0x54   :  { %728 = vmatprep.subr.bf16.mxu0 %v3848_v56  ;;  %v3912_v56 = vld [vmem:[%s5795_s1 + $0x2a0] ss:$8 sps:$4 sm:$0xff]  }
  0x57   :  { %729 = vmatpush1.bf16.msra.mxu0 %v3846_v57  ;;  %v3917_v57 = vld [vmem:[%s5795_s1 + $0x2b4] ss:$8 sps:$4 sm:$0xff]  }
  0x58   :  { %730 = vmatprep.subr.bf16.mxu0 %v3851_v60  ;;  %v3918_v60 = vld [vmem:[%s5795_s1 + $0x2c0] ss:$8 sps:$4 sm:$0xff]  }
  0x5b   :  { %731 = vmatpush1.bf16.msra.mxu0 %v3849_v61  ;;  %v3923_v61 = vld [vmem:[%s5795_s1 + $0x2d4] ss:$8 sps:$4 sm:$0xff]  }
  0x5c   :  { %732 = vmatprep.subr.bf16.mxu0 %v3854_v62  ;;  %v3921_v62 = vld [vmem:[%s5795_s1 + $0x2d0] ss:$8 sps:$4 sm:$0xff]  }
  0x5f   :  { %733 = vmatpush1.bf16.msra.mxu0 %v3852_v2  ;;  %v3929_v2 = vld [vmem:[%s5795_s1 + $0x2f0] ss:$8 sps:$4 sm:$0xff]  }
  0x60   :  { %734 = vmatprep.subr.bf16.mxu0 %v3857_v4  ;;  %v3978_v4 = vld [vmem:[%s5797_s3 + $0x1a4] ss:$16 sps:$4 sm:$0xff]  }
  0x61   :  { %1285 = vmatprep.subr.bf16.mxu1 %v3978_v4  ;;  %v3985_v4 = vld [vmem:[%s5797_s3 + $0x8] ss:$16 sps:$4 sm:$0xff]  }
  0x62   :  { %1286 = vmatpush1.bf16.msra.mxu1 %v3976_v5  ;;  %v3990_v5 = vld [vmem:[%s5797_s3 + $0x2c] ss:$16 sps:$4 sm:$0xff]  }
  0x63   :  { %735 = vmatpush1.bf16.msra.mxu0 %v3855_v6  ;;  %v3981_v6 = vld [vmem:[%s5797_s3 + $0x1c4] ss:$16 sps:$4 sm:$0xff]  }
  0x64   :  { %736 = vmatprep.subr.bf16.mxu0 %v3860_v8  ;;  %1287 = vmatprep.subr.bf16.mxu1 %v3981_v6  ;;  %v3988_v6 = vld [vmem:[%s5797_s3 + $0x28] ss:$16 sps:$4 sm:$0xff]  }
  0x66   :  { %1288 = vmatpush1.bf16.msra.mxu1 %v3979_v7  ;;  %v3993_v7 = vld [vmem:[%s5797_s3 + $0x4c] ss:$16 sps:$4 sm:$0xff]  }
  0x67   :  { %737 = vmatpush1.bf16.msra.mxu0 %v3858_v10  ;;  %1289 = vmatprep.subr.bf16.mxu1 %v3984_v9  ;;  %v3996_v9 = vld [vmem:[%s5797_s3 + $0x6c] ss:$16 sps:$4 sm:$0xff]  }
  0x68   :  { %738 = vmatprep.subr.bf16.mxu0 %v3863_v12 }
  0x6a   :  { %1290 = vmatpush1.bf16.msra.mxu1 %v3982_v11  ;;  %v3999_v11 = vld [vmem:[%s5797_s3 + $0x8c] ss:$16 sps:$4 sm:$0xff]  }
  0x6b   :  { %739 = vmatpush1.bf16.msra.mxu0 %v3861_v14  ;;  %v3987_v14 = vld [vmem:[%s5797_s3 + $0xc] ss:$16 sps:$4 sm:$0xff]  }
  0x6c   :  { %740 = vmatprep.subr.bf16.mxu0 %v3866_v16  ;;  %1302 = vmatprep.subr.bf16.mxu1 %v3987_v14  ;;  %v4038_v16 = vld [vmem:[%s5799_s5 + $0xc] ss:$28 sps:$4 sm:$0xff]  }
  0x6d   :  { %v4000_v14 = vld [vmem:[%s5797_s3 + $0xa8] ss:$16 sps:$4 sm:$0xff]  }
  0x6f   :  { %741 = vmatpush1.bf16.msra.mxu0 %v3864_v18  ;;  %v4042_v18 = vld [vmem:[%s5799_s5 + $0x40] ss:$28 sps:$4 sm:$0xff]  }
  0x70   :  { %742 = vmatprep.subr.bf16.mxu0 %v3869_v20  ;;  %v4048_v20 = vld [vmem:[%s5799_s5 + $0x78] ss:$28 sps:$4 sm:$0xff]  }
  0x73   :  { %743 = vmatpush1.bf16.msra.mxu0 %v3867_v22  ;;  %v4054_v22 = vld [vmem:[%s5799_s5 + $0xb0] ss:$28 sps:$4 sm:$0xff]  }
  0x74   :  { %744 = vmatprep.subr.bf16.mxu0 %v3872_v24  ;;  %v4060_v24 = vld [vmem:[%s5799_s5 + $0xe8] ss:$28 sps:$4 sm:$0xff]  }
  0x77   :  { %745 = vmatpush1.bf16.msra.mxu0 %v3870_v26  ;;  %v4066_v26 = vld [vmem:[%s5799_s5 + $0x120] ss:$28 sps:$4 sm:$0xff]  }
  0x78   :  { %746 = vmatprep.subr.bf16.mxu0 %v3875_v28  ;;  %v4072_v28 = vld [vmem:[%s5799_s5 + $0x158] ss:$28 sps:$4 sm:$0xff]  }
  0x7b   :  { %747 = vmatpush1.bf16.msra.mxu0 %v3873_v30  ;;  %v4078_v30 = vld [vmem:[%s5799_s5 + $0x190] ss:$28 sps:$4 sm:$0xff]  }
  0x7c   :  { %748 = vmatprep.subr.bf16.mxu0 %v3878_v31  ;;  %v4086_v31 = vld [vmem:[%s5799_s5 + $0x1cc] ss:$28 sps:$4 sm:$0xff]  }
  0x7f   :  { %749 = vmatpush1.bf16.msra.mxu0 %v3876_v32  ;;  %v4084_v32 = vld [vmem:[%s5799_s5 + $0x1c8] ss:$28 sps:$4 sm:$0xff]  }
  0x80   :  { %761 = vmatprep.subr.bf16.mxu0 %v3884_v33  ;;  %v4092_v33 = vld [vmem:[%s5799_s5 + $0x204] ss:$28 sps:$4 sm:$0xff]  }
  0x82   :  { %751 = vmatmul.mubr.bf16.vlgmr.msra.gmra.mrb[0].mxu0 %v3879_v34  ;;  %v136_v34 = vlaneseq }
  0x83   :  { %762 = vmatpush1.bf16.msra.mxu0 %v3882_v35  ;;  %793 = vmatprep.mubr.bf16.mxu0 %v3935_v36  ;;  %v4090_v35 = vld [vmem:[%s5799_s5 + $0x200] ss:$28 sps:$4 sm:$0xff]  }
  0x84   :  { %763 = vmatprep.subr.bf16.mxu0 %v3887_v37  ;;  %v4098_v36 = vld [vmem:[%s5799_s5 + $0x23c] ss:$28 sps:$4 sm:$0xff]   ;;  %v4963_v37 = vshrl.u32 %v136_v34, 7 }
  0x85   :  { %v4030_v34 = vld [vmem:[%s5797_s3 + $0x1e8] ss:$16 sps:$4 sm:$0xff]  }
  0x87   :  { %764 = vmatpush1.bf16.msra.mxu0 %v3885_v38  ;;  %v4096_v38 = vld [vmem:[%s5799_s5 + $0x238] ss:$28 sps:$4 sm:$0xff]  }
  0x88   :  { %765 = vmatprep.subr.bf16.mxu0 %v3890_v39  ;;  %v4104_v39 = vld [vmem:[%s5799_s5 + $0x274] ss:$28 sps:$4 sm:$0xff]  }
  0x8b   :  { %766 = vmatpush1.bf16.msra.mxu0 %v3888_v40  ;;  %v4972_v40 = vsub.s32 0, %v4963_v37 }
  0x8c   :  { %767 = vmatprep.subr.bf16.mxu0 %v3893_v41  ;;  %v4102_v41 = vld [vmem:[%s5799_s5 + $0x270] ss:$28 sps:$4 sm:$0xff]  }
  0x8f   :  { %768 = vmatpush1.bf16.msra.mxu0 %v3891_v42  ;;  %v134_v42 = vld [vmem:[%s5796_s2] sm:$0x3] }
  0x90   :  { %769 = vmatprep.subr.bf16.mxu0 %v3896_v43  ;;  %v4981_v43 = vsub.s32 1, %v4963_v37 }
  0x93   :  { %770 = vmatpush1.bf16.msra.mxu0 %v3894_v44  ;;  %v4110_v44 = vld [vmem:[%s5799_s5 + $0x2ac] ss:$28 sps:$4 sm:$0xff]  }
  0x94   :  { %771 = vmatprep.subr.bf16.mxu0 %v3899_v45  ;;  %v139_v45 = vrot.slane %v134_v42, %v4972_v40 }
  0x97   :  { %772 = vmatpush1.bf16.msra.mxu0 %v3897_v46  ;;  %v4108_v46 = vld [vmem:[%s5799_s5 + $0x2a8] ss:$28 sps:$4 sm:$0xff]  }
  0x98   :  { %773 = vmatprep.subr.bf16.mxu0 %v3902_v47  ;;  %v143_v47 = vrot.slane %v134_v42, %v4981_v43  ;;  %v4045_v42 = vld [vmem:[%s5799_s5 + $0x70] ss:$28 sps:$4 sm:$0xff]  }
  0x9b   :  { %774 = vmatpush1.bf16.msra.mxu0 %v3900_v48  ;;  %v4116_v48 = vld [vmem:[%s5799_s5 + $0x2e4] ss:$28 sps:$4 sm:$0xff]  }
  0x9c   :  { %775 = vmatprep.subr.bf16.mxu0 %v3905_v49 }
  0x9f   :  { %776 = vmatpush1.bf16.msra.mxu0 %v3903_v50 }
  0xa0   :  { %777 = vmatprep.subr.bf16.mxu0 %v3908_v51 }
  0xa3   :  { %778 = vmatpush1.bf16.msra.mxu0 %v3906_v52  ;;  %v4114_v52 = vld [vmem:[%s5799_s5 + $0x2e0] ss:$28 sps:$4 sm:$0xff]  }
  0xa4   :  { %779 = vmatprep.subr.bf16.mxu0 %v3911_v53 }
  0xa7   :  { %780 = vmatpush1.bf16.msra.mxu0 %v3909_v54 }
  0xa8   :  { %781 = vmatprep.subr.bf16.mxu0 %v3914_v55 }
  0xab   :  { %782 = vmatpush1.bf16.msra.mxu0 %v3912_v56 }
  0xac   :  { %783 = vmatprep.subr.bf16.mxu0 %v3917_v57 }
  0xaf   :  { %784 = vmatpush1.bf16.msra.mxu0 %v3915_v58 }
  0xb0   :  { %785 = vmatprep.subr.bf16.mxu0 %v3920_v59 }
  0xb3   :  { %786 = vmatpush1.bf16.msra.mxu0 %v3918_v60 }
  0xb4   :  { %787 = vmatprep.subr.bf16.mxu0 %v3923_v61 }
  0xb7   :  { %788 = vmatpush1.bf16.msra.mxu0 %v3921_v62 }
  0xb8   :  { %789 = vmatprep.subr.bf16.mxu0 %v3926_v63 }
  0xbb   :  { %790 = vmatpush1.bf16.msra.mxu0 %v3924_v0 }
  0xbc   :  { %791 = vmatprep.subr.bf16.mxu0 %v3931_v1 }
  0xbf   :  { %792 = vmatpush1.bf16.msra.mxu0 %v3929_v2 }
  0xc0   :  { %2888 = vmatprep.subr.bf16.mxu0 %v4038_v16  ;;  %v4003_v16 = vld [vmem:[%s5797_s3 + $0xc8] ss:$16 sps:$4 sm:$0xff]  }
  0xc2   :  { %794 = vmatmul.mubr.bf16.vlgmr.msra.gmra.mrb[0].mxu0 %v3933_v3 }
  0xc3   :  { %2889 = vmatpush1.bf16.msra.mxu0 %v4036_v15  ;;  %v4005_v15 = vld [vmem:[%s5797_s3 + $0xcc] ss:$16 sps:$4 sm:$0xff]  }
  0xc4   :  { %2890 = vmatprep.subr.bf16.mxu0 %v4044_v17  ;;  %v4008_v17 = vld [vmem:[%s5797_s3 + $0xec] ss:$16 sps:$4 sm:$0xff]  }
  0xc7   :  { %2891 = vmatpush1.bf16.msra.mxu0 %v4042_v18  ;;  %v4006_v18 = vld [vmem:[%s5797_s3 + $0xe8] ss:$16 sps:$4 sm:$0xff]  }
  0xc8   :  { %2892 = vmatprep.subr.bf16.mxu0 %v4050_v19  ;;  %v4011_v19 = vld [vmem:[%s5797_s3 + $0x10c] ss:$16 sps:$4 sm:$0xff]  }
  0xcb   :  { %2893 = vmatpush1.bf16.msra.mxu0 %v4048_v20  ;;  %v4009_v20 = vld [vmem:[%s5797_s3 + $0x108] ss:$16 sps:$4 sm:$0xff]  }
  0xcc   :  { %2894 = vmatprep.subr.bf16.mxu0 %v4056_v21  ;;  %v4014_v21 = vld [vmem:[%s5797_s3 + $0x12c] ss:$16 sps:$4 sm:$0xff]  }
  0xcf   :  { %2895 = vmatpush1.bf16.msra.mxu0 %v4054_v22  ;;  %v4012_v22 = vld [vmem:[%s5797_s3 + $0x128] ss:$16 sps:$4 sm:$0xff]  }
  0xd0   :  { %2896 = vmatprep.subr.bf16.mxu0 %v4062_v23  ;;  %v4017_v23 = vld [vmem:[%s5797_s3 + $0x14c] ss:$16 sps:$4 sm:$0xff]  }
  0xd3   :  { %2897 = vmatpush1.bf16.msra.mxu0 %v4060_v24  ;;  %v4015_v24 = vld [vmem:[%s5797_s3 + $0x148] ss:$16 sps:$4 sm:$0xff]  }
  0xd4   :  { %2898 = vmatprep.subr.bf16.mxu0 %v4068_v25  ;;  %v4020_v25 = vld [vmem:[%s5797_s3 + $0x16c] ss:$16 sps:$4 sm:$0xff]  }
  0xd7   :  { %2899 = vmatpush1.bf16.msra.mxu0 %v4066_v26  ;;  %v4018_v26 = vld [vmem:[%s5797_s3 + $0x168] ss:$16 sps:$4 sm:$0xff]  }
  0xd8   :  { %2900 = vmatprep.subr.bf16.mxu0 %v4074_v27  ;;  %v4023_v27 = vld [vmem:[%s5797_s3 + $0x18c] ss:$16 sps:$4 sm:$0xff]  }
  0xdb   :  { %2901 = vmatpush1.bf16.msra.mxu0 %v4072_v28  ;;  %v4021_v28 = vld [vmem:[%s5797_s3 + $0x188] ss:$16 sps:$4 sm:$0xff]  }
  0xdc   :  { %2902 = vmatprep.subr.bf16.mxu0 %v4080_v29  ;;  %v4026_v29 = vld [vmem:[%s5797_s3 + $0x1ac] ss:$16 sps:$4 sm:$0xff]  }
  0xdf   :  { %2903 = vmatpush1.bf16.msra.mxu0 %v4078_v30  ;;  %v4024_v30 = vld [vmem:[%s5797_s3 + $0x1a8] ss:$16 sps:$4 sm:$0xff]  }
  0xe0   :  { %2904 = vmatprep.subr.bf16.mxu0 %v4086_v31  ;;  %v4029_v31 = vld [vmem:[%s5797_s3 + $0x1cc] ss:$16 sps:$4 sm:$0xff]  }
  0xe3   :  { %2905 = vmatpush1.bf16.msra.mxu0 %v4084_v32  ;;  %v4027_v32 = vld [vmem:[%s5797_s3 + $0x1c8] ss:$16 sps:$4 sm:$0xff]  }
  0xe4   :  { %2906 = vmatprep.subr.bf16.mxu0 %v4092_v33  ;;  %v4032_v33 = vld [vmem:[%s5797_s3 + $0x1ec] ss:$16 sps:$4 sm:$0xff]  }
  0xe6   :  { %v4883_v8 = vpop.f32.mrb[0].mxu1 }
  0xe7   :  { %v4888_v10 = vpop.f32.mrb[1].mxu1  ;;  %2907 = vmatpush1.bf16.msra.mxu0 %v4090_v35  ;;  %v4035_v35 = vld [vmem:[%s5799_s5 + $0x4] ss:$28 sps:$4 sm:$0xff]  }
  0xe8   :  { %v4893_v12 = vpop.f32.mrb[2].mxu1  ;;  %2908 = vmatprep.subr.bf16.mxu0 %v4098_v36  ;;  %v4033_v36 = vld [vmem:[%s5799_s5] ss:$28 sps:$4 sm:$0xff]  }
  0xe9   :  { %v4895_v13 = vpop.f32.mrb[3].mxu1 }
  0xeb   :  { %2909 = vmatpush1.bf16.msra.mxu0 %v4096_v38  ;;  %v4041_v38 = vld [vmem:[%s5799_s5 + $0x3c] ss:$28 sps:$4 sm:$0xff]  }
  0xec   :  { %2910 = vmatprep.subr.bf16.mxu0 %v4104_v39  ;;  %v4039_v39 = vld [vmem:[%s5799_s5 + $0x38] ss:$28 sps:$4 sm:$0xff]  }
  0xef   :  { %2911 = vmatpush1.bf16.msra.mxu0 %v4102_v41  ;;  %v4047_v41 = vld [vmem:[%s5799_s5 + $0x74] ss:$28 sps:$4 sm:$0xff]  }
  0xf0   :  { %2912 = vmatprep.subr.bf16.mxu0 %v4110_v44  ;;  %v4053_v44 = vld [vmem:[%s5799_s5 + $0xac] ss:$28 sps:$4 sm:$0xff]  }
  0xf3   :  { %2913 = vmatpush1.bf16.msra.mxu0 %v4108_v46  ;;  %v4059_v46 = vld [vmem:[%s5799_s5 + $0xe4] ss:$28 sps:$4 sm:$0xff]  }
  0xf4   :  { %2914 = vmatprep.subr.bf16.mxu0 %v4116_v48  ;;  %v4065_v48 = vld [vmem:[%s5799_s5 + $0x11c] ss:$28 sps:$4 sm:$0xff]  }
  0xf7   :  { %2915 = vmatpush1.bf16.msra.mxu0 %v4114_v52  ;;  %v4069_v52 = vld [vmem:[%s5799_s5 + $0x150] ss:$28 sps:$4 sm:$0xff]  }
 0x195   :  { %v795_v49 = vpop.f32.mrb[0].mxu0 }
 0x196   :  { %v3736_v50 = vadd.f32 %v795_v49, %v139_v45  ;;  %v797_v51 = vpop.f32.mrb[1].mxu0  ;;  %v4063_v49 = vld [vmem:[%s5799_s5 + $0x118] ss:$28 sps:$4 sm:$0xff]  }
 0x197   :  { %v3738_v53 = vadd.f32 %v797_v51, %v143_v47  ;;  %v799_v54 = vpop.f32.mrb[2].mxu0  ;;  %v4122_v51 = vld [vmem:[%s5799_s5 + $0x31c] ss:$28 sps:$4 sm:$0xff]  }
 0x198   :  { %v3737_v55 = vadd.f32 %v3736_v50, %v4883_v8  ;;  %v3740_v56 = vadd.f32 %v799_v54, %v139_v45  ;;  %v801_v57 = vpop.f32.mrb[3].mxu0  ;;  %v3991_v8 = vld [vmem:[%s5797_s3 + $0x48] ss:$16 sps:$4 sm:$0xff]   ;;  %v4071_v50 = vld [vmem:[%s5799_s5 + $0x154] ss:$28 sps:$4 sm:$0xff]   ;;  %2916 = vmatprep.subr.bf16.mxu0 %v4122_v51 }
 0x199   :  { %v3739_v58 = vadd.f32 %v3738_v53, %v4888_v10  ;;  %v3742_v59 = vadd.f32 %v801_v57, %v143_v47  ;;  %v3994_v10 = vld [vmem:[%s5797_s3 + $0x68] ss:$16 sps:$4 sm:$0xff]   ;;  %v4057_v47 = vld [vmem:[%s5799_s5 + $0xe0] ss:$28 sps:$4 sm:$0xff]   ;;  %v4126_v57 = vld [vmem:[%s5799_s5 + $0x350] ss:$28 sps:$4 sm:$0xff]  }
 0x19a   :  { %v3741_v60 = vadd.f32 %v3740_v56, %v4893_v12  ;;  %v847_v62 = vmax.f32 %v3737_v55, 0.0  ;;  %v3997_v12 = vld [vmem:[%s5797_s3 + $0x88] ss:$16 sps:$4 sm:$0xff]   ;;  %v4128_v55 = vld [vmem:[%s5799_s5 + $0x354] ss:$28 sps:$4 sm:$0xff]  }
 0x19b   :  { %v3743_v61 = vadd.f32 %v3742_v59, %v4895_v13  ;;  %v848_v0 = vmax.f32 %v3739_v58, 0.0  ;;  %v4002_v13 = vld [vmem:[%s5797_s3 + $0xac] ss:$16 sps:$4 sm:$0xff]   ;;  %v4051_v45 = vld [vmem:[%s5799_s5 + $0xa8] ss:$28 sps:$4 sm:$0xff]  }
 0x19c   :  { %v849_v63 = vmax.f32 %v3741_v60, 0.0  ;;  %v4120_v53 = vld [vmem:[%s5799_s5 + $0x318] ss:$28 sps:$4 sm:$0xff]   ;;  %v4077_v54 = vld [vmem:[%s5799_s5 + $0x18c] ss:$28 sps:$4 sm:$0xff]  }
 0x19d   :  { %v850_v1 = vmax.f32 %v3743_v61, 0.0  ;;  %2917 = vmatpush1.bf16.msra.mxu0 %v4120_v53  ;;  %v4075_v56 = vld [vmem:[%s5799_s5 + $0x188] ss:$28 sps:$4 sm:$0xff]   ;;  %v4081_v60 = vld [vmem:[%s5799_s5 + $0x1c0] ss:$28 sps:$4 sm:$0xff]  }
 0x19e   :  { %v5001_v2 = vpack.c.bf16 %v849_v63, %v847_v62  ;;  %v4083_v58 = vld [vmem:[%s5799_s5 + $0x1c4] ss:$28 sps:$4 sm:$0xff]   ;;  %2918 = vmatprep.subr.bf16.mxu0 %v4128_v55  ;;  %v4134_v59 = vld [vmem:[%s5799_s5 + $0x38c] ss:$28 sps:$4 sm:$0xff]   ;;  %v4089_v61 = vld [vmem:[%s5799_s5 + $0x1fc] ss:$28 sps:$4 sm:$0xff]  }
 0x19f   :  { %v852_v3 = vpack.c.bf16 %v850_v1, %v848_v0  ;;  %v4087_v62 = vld [vmem:[%s5799_s5 + $0x1f8] ss:$28 sps:$4 sm:$0xff]   ;;  %v4093_v0 = vld [vmem:[%s5799_s5 + $0x230] ss:$28 sps:$4 sm:$0xff]   ;;  %v4164_v51 = vld [vmem:[%s5799_s5 + $0x4a4] ss:$28 sps:$4 sm:$0xff]  }
 0x1a0   :  { %v4095_v63 = vld [vmem:[%s5799_s5 + $0x234] ss:$28 sps:$4 sm:$0xff]   ;;  %v4101_v1 = vld [vmem:[%s5799_s5 + $0x26c] ss:$28 sps:$4 sm:$0xff]   ;;  %v4162_v53 = vld [vmem:[%s5799_s5 + $0x4a0] ss:$28 sps:$4 sm:$0xff]  }
 0x1a1   :  { %1291 = vmatprep.mubr.bf16.mxu1 %v852_v3  ;;  %2919 = vmatpush1.bf16.msra.mxu0 %v4126_v57  ;;  %v4170_v55 = vld [vmem:[%s5799_s5 + $0x4dc] ss:$28 sps:$4 sm:$0xff]  }
 0x1a2   :  { %1292 = vmatmul.mubr.bf16.vlgmr.msra.gmra.mrb[4].mxu1 %v5001_v2  ;;  %2931 = vmatprep.subr.bf16.mxu0 %v4134_v59  ;;  %v4168_v57 = vld [vmem:[%s5799_s5 + $0x4d8] ss:$28 sps:$4 sm:$0xff]  }
 0x1a3   :  { %1303 = vmatpush1.bf16.msra.mxu1 %v3985_v4  ;;  %1334 = vmatprep.mubr.bf16.mxu1 %v852_v3  ;;  %v4107_v3 = vld [vmem:[%s5799_s5 + $0x2a4] ss:$28 sps:$4 sm:$0xff]   ;;  %v4176_v59 = vld [vmem:[%s5799_s5 + $0x514] ss:$28 sps:$4 sm:$0xff]  }
 0x1a4   :  { %1304 = vmatprep.subr.bf16.mxu1 %v3990_v5  ;;  %v4105_v4 = vld [vmem:[%s5799_s5 + $0x2a0] ss:$28 sps:$4 sm:$0xff]  }
 0x1a5   :  { %v4113_v5 = vld [vmem:[%s5799_s5 + $0x2dc] ss:$28 sps:$4 sm:$0xff]  }
 0x1a7   :  { %1305 = vmatpush1.bf16.msra.mxu1 %v3988_v6  ;;  %v4111_v6 = vld [vmem:[%s5799_s5 + $0x2d8] ss:$28 sps:$4 sm:$0xff]  }
 0x1a8   :  { %1306 = vmatprep.subr.bf16.mxu1 %v3993_v7  ;;  %v4119_v7 = vld [vmem:[%s5799_s5 + $0x314] ss:$28 sps:$4 sm:$0xff]  }
 0x1ab   :  { %1307 = vmatpush1.bf16.msra.mxu1 %v3991_v8  ;;  %v4117_v8 = vld [vmem:[%s5799_s5 + $0x310] ss:$28 sps:$4 sm:$0xff]  }
 0x1ac   :  { %1308 = vmatprep.subr.bf16.mxu1 %v3996_v9  ;;  %v4125_v9 = vld [vmem:[%s5799_s5 + $0x34c] ss:$28 sps:$4 sm:$0xff]  }
 0x1af   :  { %1309 = vmatpush1.bf16.msra.mxu1 %v3994_v10  ;;  %v4123_v10 = vld [vmem:[%s5799_s5 + $0x348] ss:$28 sps:$4 sm:$0xff]  }
 0x1b0   :  { %1310 = vmatprep.subr.bf16.mxu1 %v3999_v11  ;;  %v4131_v11 = vld [vmem:[%s5799_s5 + $0x384] ss:$28 sps:$4 sm:$0xff]  }
 0x1b3   :  { %1311 = vmatpush1.bf16.msra.mxu1 %v3997_v12  ;;  %v5215_v12 = vld [vmem:[%s5798_s4] sm:$0xf] }
 0x1b4   :  { %1312 = vmatprep.subr.bf16.mxu1 %v4002_v13  ;;  %v922_v13 = vrot.slane %v5215_v12, %v4972_v40 }
 0x1b7   :  { %1313 = vmatpush1.bf16.msra.mxu1 %v4000_v14  ;;  %v926_v14 = vrot.slane %v5215_v12, %v4981_v43 }
 0x1b8   :  { %1314 = vmatprep.subr.bf16.mxu1 %v4005_v15 }
 0x1bb   :  { %1315 = vmatpush1.bf16.msra.mxu1 %v4003_v16 }
 0x1bc   :  { %1316 = vmatprep.subr.bf16.mxu1 %v4008_v17 }
 0x1bf   :  { %1317 = vmatpush1.bf16.msra.mxu1 %v4006_v18 }
 0x1c0   :  { %1318 = vmatprep.subr.bf16.mxu1 %v4011_v19 }
 0x1c3   :  { %1319 = vmatpush1.bf16.msra.mxu1 %v4009_v20 }
 0x1c4   :  { %1320 = vmatprep.subr.bf16.mxu1 %v4014_v21 }
 0x1c7   :  { %1321 = vmatpush1.bf16.msra.mxu1 %v4012_v22 }
 0x1c8   :  { %1322 = vmatprep.subr.bf16.mxu1 %v4017_v23 }
 0x1cb   :  { %1323 = vmatpush1.bf16.msra.mxu1 %v4015_v24 }
 0x1cc   :  { %1324 = vmatprep.subr.bf16.mxu1 %v4020_v25 }
 0x1cf   :  { %1325 = vmatpush1.bf16.msra.mxu1 %v4018_v26 }
 0x1d0   :  { %1326 = vmatprep.subr.bf16.mxu1 %v4023_v27 }
 0x1d3   :  { %1327 = vmatpush1.bf16.msra.mxu1 %v4021_v28 }
 0x1d4   :  { %1328 = vmatprep.subr.bf16.mxu1 %v4026_v29  ;;  %v4129_v29 = vld [vmem:[%s5799_s5 + $0x380] ss:$28 sps:$4 sm:$0xff]  }
 0x1d7   :  { %1329 = vmatpush1.bf16.msra.mxu1 %v4024_v30  ;;  %v4132_v30 = vld [vmem:[%s5799_s5 + $0x388] ss:$28 sps:$4 sm:$0xff]  }
 0x1d8   :  { %1330 = vmatprep.subr.bf16.mxu1 %v4029_v31  ;;  %v4137_v31 = vld [vmem:[%s5799_s5 + $0x3bc] ss:$28 sps:$4 sm:$0xff]  }
 0x1db   :  { %1331 = vmatpush1.bf16.msra.mxu1 %v4027_v32  ;;  %v4140_v32 = vld [vmem:[%s5799_s5 + $0x3c4] ss:$28 sps:$4 sm:$0xff]  }
 0x1dc   :  { %1332 = vmatprep.subr.bf16.mxu1 %v4032_v33  ;;  %v4135_v33 = vld [vmem:[%s5799_s5 + $0x3b8] ss:$28 sps:$4 sm:$0xff]  }
 0x1df   :  { %1333 = vmatpush1.bf16.msra.mxu1 %v4030_v34  ;;  %v4138_v34 = vld [vmem:[%s5799_s5 + $0x3c0] ss:$28 sps:$4 sm:$0xff]  }
 0x1e0   :  { %2802 = vmatprep.subr.bf16.mxu1 %v4035_v35  ;;  %v4143_v35 = vld [vmem:[%s5799_s5 + $0x3f4] ss:$28 sps:$4 sm:$0xff]  }
 0x1e2   :  { %1335 = vmatmul.mubr.bf16.vlgmr.msra.gmra.mrb[8].mxu1 %v5001_v2  ;;  %v4099_v2 = vld [vmem:[%s5799_s5 + $0x268] ss:$28 sps:$4 sm:$0xff]  }
 0x1e3   :  { %2803 = vmatpush1.bf16.msra.mxu1 %v4033_v36  ;;  %v4146_v36 = vld [vmem:[%s5799_s5 + $0x3fc] ss:$28 sps:$4 sm:$0xff]  }
 0x1e4   :  { %2804 = vmatprep.subr.bf16.mxu1 %v4041_v38  ;;  %v4141_v38 = vld [vmem:[%s5799_s5 + $0x3f0] ss:$28 sps:$4 sm:$0xff]  }
 0x1e7   :  { %2805 = vmatpush1.bf16.msra.mxu1 %v4039_v39  ;;  %v4144_v39 = vld [vmem:[%s5799_s5 + $0x3f8] ss:$28 sps:$4 sm:$0xff]  }
 0x1e8   :  { %2806 = vmatprep.subr.bf16.mxu1 %v4047_v41  ;;  %v4149_v41 = vld [vmem:[%s5799_s5 + $0x42c] ss:$28 sps:$4 sm:$0xff]  }
 0x1eb   :  { %2807 = vmatpush1.bf16.msra.mxu1 %v4045_v42  ;;  %v4152_v42 = vld [vmem:[%s5799_s5 + $0x434] ss:$28 sps:$4 sm:$0xff]  }
 0x1ec   :  { %2808 = vmatprep.subr.bf16.mxu1 %v4053_v44  ;;  %v4147_v44 = vld [vmem:[%s5799_s5 + $0x428] ss:$28 sps:$4 sm:$0xff]  }
 0x1ef   :  { %2809 = vmatpush1.bf16.msra.mxu1 %v4051_v45  ;;  %v4150_v45 = vld [vmem:[%s5799_s5 + $0x430] ss:$28 sps:$4 sm:$0xff]  }
 0x1f0   :  { %2810 = vmatprep.subr.bf16.mxu1 %v4059_v46  ;;  %v4155_v46 = vld [vmem:[%s5799_s5 + $0x464] ss:$28 sps:$4 sm:$0xff]  }
 0x1f3   :  { %2811 = vmatpush1.bf16.msra.mxu1 %v4057_v47  ;;  %v4158_v47 = vld [vmem:[%s5799_s5 + $0x46c] ss:$28 sps:$4 sm:$0xff]  }
 0x1f4   :  { %2812 = vmatprep.subr.bf16.mxu1 %v4065_v48  ;;  %v4153_v48 = vld [vmem:[%s5799_s5 + $0x460] ss:$28 sps:$4 sm:$0xff]  }
 0x1f7   :  { %2813 = vmatpush1.bf16.msra.mxu1 %v4063_v49  ;;  %v4156_v49 = vld [vmem:[%s5799_s5 + $0x468] ss:$28 sps:$4 sm:$0xff]  }
 0x1f8   :  { %2814 = vmatprep.subr.bf16.mxu1 %v4071_v50  ;;  %v4161_v50 = vld [vmem:[%s5799_s5 + $0x49c] ss:$28 sps:$4 sm:$0xff]  }
 0x1fb   :  { %2815 = vmatpush1.bf16.msra.mxu1 %v4069_v52  ;;  %v4159_v52 = vld [vmem:[%s5799_s5 + $0x498] ss:$28 sps:$4 sm:$0xff]  }
 0x1fc   :  { %2816 = vmatprep.subr.bf16.mxu1 %v4077_v54  ;;  %v4167_v54 = vld [vmem:[%s5799_s5 + $0x4d4] ss:$28 sps:$4 sm:$0xff]  }
 0x1ff   :  { %2817 = vmatpush1.bf16.msra.mxu1 %v4075_v56  ;;  %v4165_v56 = vld [vmem:[%s5799_s5 + $0x4d0] ss:$28 sps:$4 sm:$0xff]  }
 0x200   :  { %2818 = vmatprep.subr.bf16.mxu1 %v4083_v58  ;;  %v4173_v58 = vld [vmem:[%s5799_s5 + $0x50c] ss:$28 sps:$4 sm:$0xff]  }
 0x203   :  { %2819 = vmatpush1.bf16.msra.mxu1 %v4081_v60  ;;  %v4171_v60 = vld [vmem:[%s5799_s5 + $0x508] ss:$28 sps:$4 sm:$0xff]  }
 0x204   :  { %2820 = vmatprep.subr.bf16.mxu1 %v4089_v61  ;;  %v4174_v61 = vld [vmem:[%s5799_s5 + $0x510] ss:$28 sps:$4 sm:$0xff]  }
 0x207   :  { %2821 = vmatpush1.bf16.msra.mxu1 %v4087_v62  ;;  %v4179_v62 = vld [vmem:[%s5799_s5 + $0x544] ss:$28 sps:$4 sm:$0xff]  }
 0x208   :  { %2822 = vmatprep.subr.bf16.mxu1 %v4095_v63  ;;  %v4182_v63 = vld [vmem:[%s5799_s5 + $0x54c] ss:$28 sps:$4 sm:$0xff]  }
 0x20b   :  { %2823 = vmatpush1.bf16.msra.mxu1 %v4093_v0  ;;  %v4177_v0 = vld [vmem:[%s5799_s5 + $0x540] ss:$28 sps:$4 sm:$0xff]  }
 0x20c   :  { %2824 = vmatprep.subr.bf16.mxu1 %v4101_v1  ;;  %v4180_v1 = vld [vmem:[%s5799_s5 + $0x548] ss:$28 sps:$4 sm:$0xff]  }
 0x20f   :  { %2825 = vmatpush1.bf16.msra.mxu1 %v4099_v2  ;;  %v4185_v2 = vld [vmem:[%s5799_s5 + $0x57c] ss:$28 sps:$4 sm:$0xff]  }
 0x210   :  { %2826 = vmatprep.subr.bf16.mxu1 %v4107_v3  ;;  %v4188_v3 = vld [vmem:[%s5799_s5 + $0x584] ss:$28 sps:$4 sm:$0xff]  }
 0x213   :  { %2827 = vmatpush1.bf16.msra.mxu1 %v4105_v4  ;;  %v4183_v4 = vld [vmem:[%s5799_s5 + $0x578] ss:$28 sps:$4 sm:$0xff]  }
 0x214   :  { %2828 = vmatprep.subr.bf16.mxu1 %v4113_v5  ;;  %v4186_v5 = vld [vmem:[%s5799_s5 + $0x580] ss:$28 sps:$4 sm:$0xff]  }
 0x217   :  { %2829 = vmatpush1.bf16.msra.mxu1 %v4111_v6  ;;  %v4191_v6 = vld [vmem:[%s5799_s5 + $0x5b4] ss:$28 sps:$4 sm:$0xff]  }
 0x218   :  { %2830 = vmatprep.subr.bf16.mxu1 %v4119_v7  ;;  %v4194_v7 = vld [vmem:[%s5799_s5 + $0x5bc] ss:$28 sps:$4 sm:$0xff]  }
 0x21b   :  { %2831 = vmatpush1.bf16.msra.mxu1 %v4117_v8  ;;  %v4189_v8 = vld [vmem:[%s5799_s5 + $0x5b0] ss:$28 sps:$4 sm:$0xff]  }
 0x21c   :  { %2832 = vmatprep.subr.bf16.mxu1 %v4125_v9  ;;  %v4192_v9 = vld [vmem:[%s5799_s5 + $0x5b8] ss:$28 sps:$4 sm:$0xff]  }
 0x21f   :  { %2833 = vmatpush1.bf16.msra.mxu1 %v4123_v10  ;;  %v4197_v10 = vld [vmem:[%s5799_s5 + $0x5ec] ss:$28 sps:$4 sm:$0xff]  }
 0x220   :  { %2845 = vmatprep.subr.bf16.mxu1 %v4131_v11  ;;  %v4200_v11 = vld [vmem:[%s5799_s5 + $0x5f4] ss:$28 sps:$4 sm:$0xff]  }
 0x275   :  { %v1293_v15 = vpop.f32.mrb[4].mxu1 }
 0x276   :  { %v1294_v16 = vadd.f32 %v1293_v15, %v922_v13  ;;  %v1295_v17 = vpop.f32.mrb[5].mxu1  ;;  %v4203_v15 = vld [vmem:[%s5799_s5 + $0x624] ss:$28 sps:$4 sm:$0xff]  }
 0x277   :  { %v1296_v18 = vadd.f32 %v1295_v17, %v926_v14  ;;  %v1297_v19 = vpop.f32.mrb[6].mxu1  ;;  %v4201_v17 = vld [vmem:[%s5799_s5 + $0x620] ss:$28 sps:$4 sm:$0xff]  }
 0x278   :  { %v1298_v20 = vadd.f32 %v1297_v19, %v922_v13  ;;  %v1299_v21 = vpop.f32.mrb[7].mxu1  ;;  %v1345_v23 = vmax.f32 %v1294_v16, 0.0  ;;  %v4195_v13 = vld [vmem:[%s5799_s5 + $0x5e8] ss:$28 sps:$4 sm:$0xff]   ;;  %v4209_v19 = vld [vmem:[%s5799_s5 + $0x65c] ss:$28 sps:$4 sm:$0xff]  }
 0x279   :  { %v1300_v22 = vadd.f32 %v1299_v21, %v926_v14  ;;  %v1346_v25 = vmax.f32 %v1296_v18, 0.0  ;;  %v4198_v14 = vld [vmem:[%s5799_s5 + $0x5f0] ss:$28 sps:$4 sm:$0xff]   ;;  %v4204_v18 = vld [vmem:[%s5799_s5 + $0x628] ss:$28 sps:$4 sm:$0xff]   ;;  %v929_v21 = vsub.s32 2, %v4963_v37 }
 0x27a   :  { %v1349_v24 = vmax.f32 %v1298_v20, 0.0  ;;  %v4206_v16 = vld [vmem:[%s5799_s5 + $0x62c] ss:$28 sps:$4 sm:$0xff]   ;;  %v4212_v20 = vld [vmem:[%s5799_s5 + $0x664] ss:$28 sps:$4 sm:$0xff]  }
 0x27b   :  { %v1350_v26 = vmax.f32 %v1300_v22, 0.0  ;;  %v933_v22 = vsub.s32 3, %v4963_v37 }
 0x27c   :  { %v5221_v27 = vpack.c.bf16 %v1349_v24, %v1345_v23  ;;  %v4207_v23 = vld [vmem:[%s5799_s5 + $0x658] ss:$28 sps:$4 sm:$0xff]   ;;  %v4210_v24 = vld [vmem:[%s5799_s5 + $0x660] ss:$28 sps:$4 sm:$0xff]  }
 0x27d   :  { %v5223_v28 = vpack.c.bf16 %v1350_v26, %v1346_v25  ;;  %v930_v25 = vrot.slane %v5215_v12, %v929_v21  ;;  %v4215_v26 = vld [vmem:[%s5799_s5 + $0x694] ss:$28 sps:$4 sm:$0xff]  }
 0x27f   :  { %2834 = vmatprep.mubr.bf16.mxu1 %v5223_v28  ;;  %2920 = vmatprep.mubr.bf16.mxu0 %v5223_v28 }
 0x280   :  { %2835 = vmatmul.mubr.bf16.vlgmr.msra.gmra.mrb[12].mxu1 %v5221_v27  ;;  %2921 = vmatmul.mubr.bf16.vlgmr.msra.gmra.mrb[4].mxu0 %v5221_v27 }
 0x281   :  { %2846 = vmatpush1.bf16.msra.mxu1 %v4129_v29  ;;  %2932 = vmatpush1.bf16.msra.mxu0 %v4132_v30  ;;  %v4218_v29 = vld [vmem:[%s5799_s5 + $0x69c] ss:$28 sps:$4 sm:$0xff]   ;;  %v934_v30 = vrot.slane %v5215_v12, %v933_v22  ;;  %v4224_v12 = vld [vmem:[%s5799_s5 + $0x6d4] ss:$28 sps:$4 sm:$0xff]  }
 0x282   :  { %2847 = vmatprep.subr.bf16.mxu1 %v4137_v31  ;;  %2933 = vmatprep.subr.bf16.mxu0 %v4140_v32  ;;  %v4213_v32 = vld [vmem:[%s5799_s5 + $0x690] ss:$28 sps:$4 sm:$0xff]  }
 0x285   :  { %2848 = vmatpush1.bf16.msra.mxu1 %v4135_v33  ;;  %2934 = vmatpush1.bf16.msra.mxu0 %v4138_v34  ;;  %v4216_v33 = vld [vmem:[%s5799_s5 + $0x698] ss:$28 sps:$4 sm:$0xff]  }
 0x286   :  { %2849 = vmatprep.subr.bf16.mxu1 %v4143_v35  ;;  %2935 = vmatprep.subr.bf16.mxu0 %v4146_v36  ;;  %v4221_v36 = vld [vmem:[%s5799_s5 + $0x6cc] ss:$28 sps:$4 sm:$0xff]  }
 0x289   :  { %2850 = vmatpush1.bf16.msra.mxu1 %v4141_v38  ;;  %2936 = vmatpush1.bf16.msra.mxu0 %v4144_v39 }
 0x28a   :  { %2851 = vmatprep.subr.bf16.mxu1 %v4149_v41  ;;  %2937 = vmatprep.subr.bf16.mxu0 %v4152_v42 }
 0x28d   :  { %2852 = vmatpush1.bf16.msra.mxu1 %v4147_v44  ;;  %2938 = vmatpush1.bf16.msra.mxu0 %v4150_v45  ;;  %v4219_v45 = vld [vmem:[%s5799_s5 + $0x6c8] ss:$28 sps:$4 sm:$0xff]  }
 0x28e   :  { %2853 = vmatprep.subr.bf16.mxu1 %v4155_v46  ;;  %2939 = vmatprep.subr.bf16.mxu0 %v4158_v47  ;;  %v4222_v46 = vld [vmem:[%s5799_s5 + $0x6d0] ss:$28 sps:$4 sm:$0xff]  }
 0x291   :  { %2854 = vmatpush1.bf16.msra.mxu1 %v4153_v48  ;;  %2940 = vmatpush1.bf16.msra.mxu0 %v4156_v49  ;;  %v4227_v49 = vld [vmem:[%s5799_s5 + $0x14] ss:$28 sps:$4 sm:$0xff]  }
 0x292   :  { %2855 = vmatprep.subr.bf16.mxu1 %v4161_v50  ;;  %2941 = vmatprep.subr.bf16.mxu0 %v4164_v51  ;;  %v4228_v50 = vld [vmem:[%s5799_s5 + $0x1d8] ss:$28 sps:$4 sm:$0xff]  }
 0x295   :  { %2856 = vmatpush1.bf16.msra.mxu1 %v4159_v52  ;;  %2942 = vmatpush1.bf16.msra.mxu0 %v4162_v53 }
 0x296   :  { %2857 = vmatprep.subr.bf16.mxu1 %v4167_v54  ;;  %2943 = vmatprep.subr.bf16.mxu0 %v4170_v55  ;;  %v4225_v55 = vld [vmem:[%s5799_s5 + $0x10] ss:$28 sps:$4 sm:$0xff]  }
 0x299   :  { %2858 = vmatpush1.bf16.msra.mxu1 %v4165_v56  ;;  %2944 = vmatpush1.bf16.msra.mxu0 %v4168_v57  ;;  %v4229_v56 = vld [vmem:[%s5799_s5 + $0x18] ss:$28 sps:$4 sm:$0xff]   ;;  %v4232_v57 = vld [vmem:[%s5799_s5 + $0x4c] ss:$28 sps:$4 sm:$0xff]  }
 0x29a   :  { %2859 = vmatprep.subr.bf16.mxu1 %v4173_v58  ;;  %2945 = vmatprep.subr.bf16.mxu0 %v4176_v59  ;;  %v4233_v58 = vld [vmem:[%s5799_s5 + $0x210] ss:$28 sps:$4 sm:$0xff]   ;;  %v4230_v59 = vld [vmem:[%s5799_s5 + $0x48] ss:$28 sps:$4 sm:$0xff]  }
 0x29d   :  { %2860 = vmatpush1.bf16.msra.mxu1 %v4171_v60  ;;  %2946 = vmatpush1.bf16.msra.mxu0 %v4174_v61  ;;  %v4234_v60 = vld [vmem:[%s5799_s5 + $0x50] ss:$28 sps:$4 sm:$0xff]   ;;  %v4237_v61 = vld [vmem:[%s5799_s5 + $0x84] ss:$28 sps:$4 sm:$0xff]  }
 0x29e   :  { %2861 = vmatprep.subr.bf16.mxu1 %v4179_v62  ;;  %2947 = vmatprep.subr.bf16.mxu0 %v4182_v63  ;;  %v4238_v62 = vld [vmem:[%s5799_s5 + $0x248] ss:$28 sps:$4 sm:$0xff]   ;;  %v4235_v63 = vld [vmem:[%s5799_s5 + $0x80] ss:$28 sps:$4 sm:$0xff]  }
 0x2a1   :  { %2862 = vmatpush1.bf16.msra.mxu1 %v4177_v0  ;;  %2948 = vmatpush1.bf16.msra.mxu0 %v4180_v1  ;;  %v4242_v0 = vld [vmem:[%s5799_s5 + $0xbc] ss:$28 sps:$4 sm:$0xff]  }
 0x2a2   :  { %2863 = vmatprep.subr.bf16.mxu1 %v4185_v2  ;;  %2949 = vmatprep.subr.bf16.mxu0 %v4188_v3  ;;  %v4243_v1 = vld [vmem:[%s5799_s5 + $0x280] ss:$28 sps:$4 sm:$0xff]   ;;  %v4240_v2 = vld [vmem:[%s5799_s5 + $0xb8] ss:$28 sps:$4 sm:$0xff]  }
 0x2a3   :  { %v4244_v3 = vld [vmem:[%s5799_s5 + $0xc0] ss:$28 sps:$4 sm:$0xff]  }
 0x2a5   :  { %2864 = vmatpush1.bf16.msra.mxu1 %v4183_v4  ;;  %2950 = vmatpush1.bf16.msra.mxu0 %v4186_v5  ;;  %v4247_v4 = vld [vmem:[%s5799_s5 + $0xf4] ss:$28 sps:$4 sm:$0xff]  }
 0x2a6   :  { %2865 = vmatprep.subr.bf16.mxu1 %v4191_v6  ;;  %2951 = vmatprep.subr.bf16.mxu0 %v4194_v7  ;;  %v4248_v5 = vld [vmem:[%s5799_s5 + $0x2b8] ss:$28 sps:$4 sm:$0xff]   ;;  %v4245_v6 = vld [vmem:[%s5799_s5 + $0xf0] ss:$28 sps:$4 sm:$0xff]  }
 0x2a7   :  { %v4249_v7 = vld [vmem:[%s5799_s5 + $0xf8] ss:$28 sps:$4 sm:$0xff]  }
 0x2a9   :  { %2866 = vmatpush1.bf16.msra.mxu1 %v4189_v8  ;;  %2952 = vmatpush1.bf16.msra.mxu0 %v4192_v9  ;;  %v4252_v8 = vld [vmem:[%s5799_s5 + $0x12c] ss:$28 sps:$4 sm:$0xff]  }
 0x2aa   :  { %2867 = vmatprep.subr.bf16.mxu1 %v4197_v10  ;;  %2953 = vmatprep.subr.bf16.mxu0 %v4200_v11  ;;  %v4253_v9 = vld [vmem:[%s5799_s5 + $0x2f0] ss:$28 sps:$4 sm:$0xff]   ;;  %v4250_v10 = vld [vmem:[%s5799_s5 + $0x128] ss:$28 sps:$4 sm:$0xff]  }
 0x2ab   :  { %v4254_v11 = vld [vmem:[%s5799_s5 + $0x130] ss:$28 sps:$4 sm:$0xff]  }
 0x2ad   :  { %2868 = vmatpush1.bf16.msra.mxu1 %v4195_v13  ;;  %2954 = vmatpush1.bf16.msra.mxu0 %v4198_v14  ;;  %v4257_v13 = vld [vmem:[%s5799_s5 + $0x164] ss:$28 sps:$4 sm:$0xff]  }
 0x2ae   :  { %2869 = vmatprep.subr.bf16.mxu1 %v4203_v15  ;;  %2955 = vmatprep.subr.bf16.mxu0 %v4206_v16  ;;  %v4258_v14 = vld [vmem:[%s5799_s5 + $0x328] ss:$28 sps:$4 sm:$0xff]   ;;  %v4255_v15 = vld [vmem:[%s5799_s5 + $0x160] ss:$28 sps:$4 sm:$0xff]  }
 0x2af   :  { %v4259_v16 = vld [vmem:[%s5799_s5 + $0x168] ss:$28 sps:$4 sm:$0xff]  }
 0x2b1   :  { %2870 = vmatpush1.bf16.msra.mxu1 %v4201_v17  ;;  %2956 = vmatpush1.bf16.msra.mxu0 %v4204_v18  ;;  %v4262_v17 = vld [vmem:[%s5799_s5 + $0x19c] ss:$28 sps:$4 sm:$0xff]  }
 0x2b2   :  { %2871 = vmatprep.subr.bf16.mxu1 %v4209_v19  ;;  %2957 = vmatprep.subr.bf16.mxu0 %v4212_v20  ;;  %v4263_v18 = vld [vmem:[%s5799_s5 + $0x360] ss:$28 sps:$4 sm:$0xff]   ;;  %v4260_v19 = vld [vmem:[%s5799_s5 + $0x198] ss:$28 sps:$4 sm:$0xff]  }
 0x2b3   :  { %v4264_v20 = vld [vmem:[%s5799_s5 + $0x1a0] ss:$28 sps:$4 sm:$0xff]  }
 0x2b5   :  { %v1336_v31 = vpop.f32.mrb[8].mxu1  ;;  %2872 = vmatpush1.bf16.msra.mxu1 %v4207_v23  ;;  %2958 = vmatpush1.bf16.msra.mxu0 %v4210_v24  ;;  %v4267_v23 = vld [vmem:[%s5799_s5 + $0x1d4] ss:$28 sps:$4 sm:$0xff]  }
 0x2b6   :  { %v1337_v34 = vadd.f32 %v1336_v31, %v930_v25  ;;  %v1338_v35 = vpop.f32.mrb[9].mxu1  ;;  %2873 = vmatprep.subr.bf16.mxu1 %v4215_v26  ;;  %2959 = vmatprep.subr.bf16.mxu0 %v4218_v29  ;;  %v4268_v24 = vld [vmem:[%s5799_s5 + $0x558] ss:$28 sps:$4 sm:$0xff]   ;;  %v4272_v29 = vld [vmem:[%s5799_s5 + $0x20c] ss:$28 sps:$4 sm:$0xff]  }
 0x2b7   :  { %v1339_v38 = vadd.f32 %v1338_v35, %v934_v30  ;;  %v1340_v39 = vpop.f32.mrb[10].mxu1  ;;  %v4269_v26 = vld [vmem:[%s5799_s5 + $0x398] ss:$28 sps:$4 sm:$0xff]   ;;  %v4270_v31 = vld [vmem:[%s5799_s5 + $0x208] ss:$28 sps:$4 sm:$0xff]  }
 0x2b8   :  { %v1341_v41 = vadd.f32 %v1340_v39, %v930_v25  ;;  %v1342_v42 = vpop.f32.mrb[11].mxu1  ;;  %v1347_v47 = vmax.f32 %v1337_v34, 0.0  ;;  %v4265_v25 = vld [vmem:[%s5799_s5 + $0x1d0] ss:$28 sps:$4 sm:$0xff]   ;;  %v4278_v34 = vld [vmem:[%s5799_s5 + $0x5c8] ss:$28 sps:$4 sm:$0xff]  }
 0x2b9   :  { %v1343_v44 = vadd.f32 %v1342_v42, %v934_v30  ;;  %2874 = vmatpush1.bf16.msra.mxu1 %v4213_v32  ;;  %2960 = vmatpush1.bf16.msra.mxu0 %v4216_v33  ;;  %v1348_v51 = vmax.f32 %v1339_v38, 0.0  ;;  %v4273_v30 = vld [vmem:[%s5799_s5 + $0x590] ss:$28 sps:$4 sm:$0xff]   ;;  %v4277_v33 = vld [vmem:[%s5799_s5 + $0x244] ss:$28 sps:$4 sm:$0xff]  }
 0x2ba   :  { %v1351_v48 = vmax.f32 %v1341_v41, 0.0  ;;  %2875 = vmatprep.subr.bf16.mxu1 %v4221_v36  ;;  %2961 = vmatprep.subr.bf16.mxu0 %v4224_v12  ;;  %v4274_v32 = vld [vmem:[%s5799_s5 + $0x3d0] ss:$28 sps:$4 sm:$0xff]   ;;  %v4275_v35 = vld [vmem:[%s5799_s5 + $0x240] ss:$28 sps:$4 sm:$0xff]  }
 0x2bb   :  { %v1352_v52 = vmax.f32 %v1343_v44, 0.0  ;;  %v4279_v36 = vld [vmem:[%s5799_s5 + $0x408] ss:$28 sps:$4 sm:$0xff]   ;;  %v4282_v12 = vld [vmem:[%s5799_s5 + $0x27c] ss:$28 sps:$4 sm:$0xff]  }
 0x2bc   :  { %v5429_v53 = vpack.c.bf16 %v1351_v48, %v1347_v47  ;;  %v4283_v38 = vld [vmem:[%s5799_s5 + $0x600] ss:$28 sps:$4 sm:$0xff]   ;;  %v4280_v39 = vld [vmem:[%s5799_s5 + $0x278] ss:$28 sps:$4 sm:$0xff]   ;;  %v4292_v47 = vld [vmem:[%s5799_s5 + $0x2ec] ss:$28 sps:$4 sm:$0xff]  }
 0x2bd   :  { %v5431_v54 = vpack.c.bf16 %v1352_v52, %v1348_v51  ;;  %2876 = vmatpush1.bf16.msra.mxu1 %v4219_v45  ;;  %2962 = vmatpush1.bf16.msra.mxu0 %v4222_v46  ;;  %v4284_v41 = vld [vmem:[%s5799_s5 + $0x440] ss:$28 sps:$4 sm:$0xff]   ;;  %v4287_v42 = vld [vmem:[%s5799_s5 + $0x2b4] ss:$28 sps:$4 sm:$0xff]   ;;  %v4298_v52 = vld [vmem:[%s5799_s5 + $0x6a8] ss:$28 sps:$4 sm:$0xff]  }
 0x2be   :  { %2974 = vmatprep.subr.bf16.mxu1 %v4227_v49  ;;  %3692 = vmatprep.subr.bf16.mxu0 %v4228_v50  ;;  %v4288_v44 = vld [vmem:[%s5799_s5 + $0x638] ss:$28 sps:$4 sm:$0xff]   ;;  %v4285_v45 = vld [vmem:[%s5799_s5 + $0x2b0] ss:$28 sps:$4 sm:$0xff]   ;;  %v4290_v49 = vld [vmem:[%s5799_s5 + $0x2e8] ss:$28 sps:$4 sm:$0xff]  }
 0x2bf   :  { %2877 = vmatprep.mubr.bf16.mxu1 %v5431_v54  ;;  %2963 = vmatprep.mubr.bf16.mxu0 %v5431_v54  ;;  %v4289_v46 = vld [vmem:[%s5799_s5 + $0x478] ss:$28 sps:$4 sm:$0xff]   ;;  %v4293_v48 = vld [vmem:[%s5799_s5 + $0x670] ss:$28 sps:$4 sm:$0xff]   ;;  %v4297_v51 = vld [vmem:[%s5799_s5 + $0x324] ss:$28 sps:$4 sm:$0xff]  }
 0x2c0   :  { %2878 = vmatmul.mubr.bf16.vlgmr.msra.gmra.mrb[12].mxu1 %v5429_v53  ;;  %2964 = vmatmul.mubr.bf16.vlgmr.msra.gmra.mrb[4].mxu0 %v5429_v53  ;;  %v4294_v50 = vld [vmem:[%s5799_s5 + $0x4b0] ss:$28 sps:$4 sm:$0xff]  }
 0x2c1   :  { %2975 = vmatpush1.bf16.msra.mxu1 %v4225_v55  ;;  %3006 = vmatprep.mubr.bf16.mxu1 %v5223_v28  ;;  %v4295_v55 = vld [vmem:[%s5799_s5 + $0x320] ss:$28 sps:$4 sm:$0xff]  }
 0x2c2   :  { %3693 = vmatpush3.bf16.msra.mxu0 %v4229_v56  ;;  %3092 = vmatprep.mubr.bf16.mxu0 %v5223_v28  ;;  %v4239_v28 = vld [vmem:[%s5799_s5 + $0x88] ss:$28 sps:$4 sm:$0xff]  }
 0x2c3   :  { %2976 = vmatprep.subr.bf16.mxu1 %v4232_v57  ;;  %3694 = vmatprep.subr.bf16.mxu0 %v4233_v58  ;;  %v4299_v56 = vld [vmem:[%s5799_s5 + $0x4e8] ss:$28 sps:$4 sm:$0xff]   ;;  %v4302_v57 = vld [vmem:[%s5799_s5 + $0x35c] ss:$28 sps:$4 sm:$0xff]  }
 0x2c4   :  { %v4303_v58 = vld [vmem:[%s5799_s5 + $0x6e0] ss:$28 sps:$4 sm:$0xff]  }
 0x2c5   :  { %2977 = vmatpush1.bf16.msra.mxu1 %v4230_v59  ;;  %v4300_v59 = vld [vmem:[%s5799_s5 + $0x358] ss:$28 sps:$4 sm:$0xff]  }
 0x2c6   :  { %3695 = vmatpush3.bf16.msra.mxu0 %v4234_v60  ;;  %2978 = vmatprep.subr.bf16.mxu1 %v4237_v61  ;;  %v4304_v60 = vld [vmem:[%s5799_s5 + $0x520] ss:$28 sps:$4 sm:$0xff]   ;;  %v4307_v61 = vld [vmem:[%s5799_s5 + $0x394] ss:$28 sps:$4 sm:$0xff]  }
 0x2c7   :  { %3696 = vmatprep.subr.bf16.mxu0 %v4238_v62  ;;  %v4305_v62 = vld [vmem:[%s5799_s5 + $0x390] ss:$28 sps:$4 sm:$0xff]  }
 0x2c9   :  { %2979 = vmatpush1.bf16.msra.mxu1 %v4235_v63  ;;  %v4310_v63 = vld [vmem:[%s5799_s5 + $0x3cc] ss:$28 sps:$4 sm:$0xff]  }
 0x2ca   :  { %3697 = vmatpush3.bf16.msra.mxu0 %v4239_v28  ;;  %2980 = vmatprep.subr.bf16.mxu1 %v4242_v0  ;;  %v4308_v28 = vld [vmem:[%s5799_s5 + $0x3c8] ss:$28 sps:$4 sm:$0xff]  }
 0x2cb   :  { %3698 = vmatprep.subr.bf16.mxu0 %v4243_v1  ;;  %v4313_v0 = vld [vmem:[%s5799_s5 + $0x404] ss:$28 sps:$4 sm:$0xff]  }
 0x2cc   :  { %v4311_v1 = vld [vmem:[%s5799_s5 + $0x400] ss:$28 sps:$4 sm:$0xff]  }
 0x2cd   :  { %2981 = vmatpush1.bf16.msra.mxu1 %v4240_v2  ;;  %v4319_v2 = vld [vmem:[%s5799_s5 + $0x474] ss:$28 sps:$4 sm:$0xff]  }
 0x2ce   :  { %3699 = vmatpush3.bf16.msra.mxu0 %v4244_v3  ;;  %2982 = vmatprep.subr.bf16.mxu1 %v4247_v4  ;;  %v4317_v3 = vld [vmem:[%s5799_s5 + $0x470] ss:$28 sps:$4 sm:$0xff]  }
 0x2cf   :  { %3700 = vmatprep.subr.bf16.mxu0 %v4248_v5  ;;  %v4322_v4 = vld [vmem:[%s5799_s5 + $0x4ac] ss:$28 sps:$4 sm:$0xff]  }
 0x2d0   :  { %v4320_v5 = vld [vmem:[%s5799_s5 + $0x4a8] ss:$28 sps:$4 sm:$0xff]  }
 0x2d1   :  { %2983 = vmatpush1.bf16.msra.mxu1 %v4245_v6  ;;  %v4325_v6 = vld [vmem:[%s5799_s5 + $0x4e4] ss:$28 sps:$4 sm:$0xff]  }
 0x2d2   :  { %3701 = vmatpush3.bf16.msra.mxu0 %v4249_v7  ;;  %2984 = vmatprep.subr.bf16.mxu1 %v4252_v8  ;;  %v4323_v7 = vld [vmem:[%s5799_s5 + $0x4e0] ss:$28 sps:$4 sm:$0xff]  }
 0x2d3   :  { %3702 = vmatprep.subr.bf16.mxu0 %v4253_v9  ;;  %v4328_v8 = vld [vmem:[%s5799_s5 + $0x51c] ss:$28 sps:$4 sm:$0xff]  }
 0x2d4   :  { %v4326_v9 = vld [vmem:[%s5799_s5 + $0x518] ss:$28 sps:$4 sm:$0xff]  }
 0x2d5   :  { %2985 = vmatpush1.bf16.msra.mxu1 %v4250_v10  ;;  %v4331_v10 = vld [vmem:[%s5799_s5 + $0x554] ss:$28 sps:$4 sm:$0xff]  }
 0x2d6   :  { %3703 = vmatpush3.bf16.msra.mxu0 %v4254_v11  ;;  %2986 = vmatprep.subr.bf16.mxu1 %v4257_v13  ;;  %v4329_v11 = vld [vmem:[%s5799_s5 + $0x550] ss:$28 sps:$4 sm:$0xff]  }
 0x2d7   :  { %3704 = vmatprep.subr.bf16.mxu0 %v4258_v14  ;;  %v4334_v13 = vld [vmem:[%s5799_s5 + $0x58c] ss:$28 sps:$4 sm:$0xff]  }
 0x2d8   :  { %v4332_v14 = vld [vmem:[%s5799_s5 + $0x588] ss:$28 sps:$4 sm:$0xff]  }
 0x2d9   :  { %2987 = vmatpush1.bf16.msra.mxu1 %v4255_v15  ;;  %v4337_v15 = vld [vmem:[%s5799_s5 + $0x5c4] ss:$28 sps:$4 sm:$0xff]  }
 0x2da   :  { %3705 = vmatpush3.bf16.msra.mxu0 %v4259_v16  ;;  %2988 = vmatprep.subr.bf16.mxu1 %v4262_v17  ;;  %v4335_v16 = vld [vmem:[%s5799_s5 + $0x5c0] ss:$28 sps:$4 sm:$0xff]  }
 0x2db   :  { %3706 = vmatprep.subr.bf16.mxu0 %v4263_v18  ;;  %v4340_v17 = vld [vmem:[%s5799_s5 + $0x5fc] ss:$28 sps:$4 sm:$0xff]  }
 0x2dc   :  { %v4338_v18 = vld [vmem:[%s5799_s5 + $0x5f8] ss:$28 sps:$4 sm:$0xff]  }
 0x2dd   :  { %2989 = vmatpush1.bf16.msra.mxu1 %v4260_v19  ;;  %v4343_v19 = vld [vmem:[%s5799_s5 + $0x634] ss:$28 sps:$4 sm:$0xff]  }
 0x2de   :  { %3707 = vmatpush3.bf16.msra.mxu0 %v4264_v20  ;;  %2990 = vmatprep.subr.bf16.mxu1 %v4267_v23  ;;  %v4341_v20 = vld [vmem:[%s5799_s5 + $0x630] ss:$28 sps:$4 sm:$0xff]  }
 0x2df   :  { %3714 = vmatprep.subr.bf16.mxu0 %v4268_v24  ;;  %v4346_v23 = vld [vmem:[%s5799_s5 + $0x66c] ss:$28 sps:$4 sm:$0xff]  }
 0x2e0   :  { %v4344_v24 = vld [vmem:[%s5799_s5 + $0x668] ss:$28 sps:$4 sm:$0xff]  }
 0x2e1   :  { %3093 = vmatmul.mubr.bf16.vlgmr.msra.gmra.mrb[8].mxu0 %v5221_v27  ;;  %2991 = vmatpush1.bf16.msra.mxu1 %v4265_v25  ;;  %v4349_v25 = vld [vmem:[%s5799_s5 + $0x6a4] ss:$28 sps:$4 sm:$0xff]  }
 0x2e2   :  { %3715 = vmatpush3.bf16.msra.mxu0 %v4269_v26  ;;  %3133 = vmatprep.mubr.bf16.mxu0 %v5431_v54  ;;  %v4347_v26 = vld [vmem:[%s5799_s5 + $0x6a0] ss:$28 sps:$4 sm:$0xff]  }
 0x2e3   :  { %2992 = vmatprep.subr.bf16.mxu1 %v4272_v29  ;;  %3716 = vmatprep.subr.bf16.mxu0 %v4273_v30  ;;  %v4352_v29 = vld [vmem:[%s5799_s5 + $0x6dc] ss:$28 sps:$4 sm:$0xff]  }
 0x2e4   :  { %v4350_v30 = vld [vmem:[%s5799_s5 + $0x6d8] ss:$28 sps:$4 sm:$0xff]  }
 0x2e5   :  { %2993 = vmatpush1.bf16.msra.mxu1 %v4270_v31  ;;  %v5730_v31 = vld [vmem:[%s5800_s6] sm:$0x7f] }
 0x2e6   :  { %3717 = vmatpush3.bf16.msra.mxu0 %v4274_v32  ;;  %2994 = vmatprep.subr.bf16.mxu1 %v4277_v33  ;;  %v1618_v32 = vrot.slane %v5730_v31, %v4972_v40  ;;  %v1626_v33 = vrot.slane %v5730_v31, %v929_v21 }
 0x2e7   :  { %3718 = vmatprep.subr.bf16.mxu0 %v4278_v34  ;;  %v1622_v34 = vrot.slane %v5730_v31, %v4981_v43 }
 0x2e9   :  { %2995 = vmatpush1.bf16.msra.mxu1 %v4275_v35  ;;  %v1630_v35 = vrot.slane %v5730_v31, %v933_v22 }
 0x2ea   :  { %3719 = vmatpush3.bf16.msra.mxu0 %v4279_v36  ;;  %2996 = vmatprep.subr.bf16.mxu1 %v4282_v12 }
 0x2eb   :  { %3720 = vmatprep.subr.bf16.mxu0 %v4283_v38 }
 0x2ed   :  { %2997 = vmatpush1.bf16.msra.mxu1 %v4280_v39 }
 0x2ee   :  { %3721 = vmatpush3.bf16.msra.mxu0 %v4284_v41  ;;  %2998 = vmatprep.subr.bf16.mxu1 %v4287_v42 }
 0x2ef   :  { %3722 = vmatprep.subr.bf16.mxu0 %v4288_v44 }
 0x2f1   :  { %2999 = vmatpush1.bf16.msra.mxu1 %v4285_v45 }
 0x2f2   :  { %3723 = vmatpush3.bf16.msra.mxu0 %v4289_v46  ;;  %3000 = vmatprep.subr.bf16.mxu1 %v4292_v47 }
 0x2f3   :  { %3724 = vmatprep.subr.bf16.mxu0 %v4293_v48 }
 0x2f5   :  { %3001 = vmatpush1.bf16.msra.mxu1 %v4290_v49 }
 0x2f6   :  { %3725 = vmatpush3.bf16.msra.mxu0 %v4294_v50  ;;  %3002 = vmatprep.subr.bf16.mxu1 %v4297_v51 }
 0x2f7   :  { %3726 = vmatprep.subr.bf16.mxu0 %v4298_v52 }
 0x2f9   :  { %3003 = vmatpush1.bf16.msra.mxu1 %v4295_v55 }
 0x2fa   :  { %3727 = vmatpush3.bf16.msra.mxu0 %v4299_v56  ;;  %3004 = vmatprep.subr.bf16.mxu1 %v4302_v57 }
 0x2fb   :  { %3728 = vmatprep.subr.bf16.mxu0 %v4303_v58 }
 0x2fd   :  { %3005 = vmatpush1.bf16.msra.mxu1 %v4300_v59 }
 0x2fe   :  { %3729 = vmatpush3.bf16.msra.mxu0 %v4304_v60  ;;  %3017 = vmatprep.subr.bf16.mxu1 %v4307_v61 }
 0x300   :  { %3007 = vmatmul.mubr.bf16.vlgmr.msra.gmra.mrb[16].mxu1 %v5221_v27  ;;  %v4316_v27 = vld [vmem:[%s5799_s5 + $0x43c] ss:$28 sps:$4 sm:$0xff]  }
 0x301   :  { %3134 = vmatmul.mubr.bf16.vlgmr.msra.gmra.mrb[12].mxu0 %v5429_v53  ;;  %3018 = vmatpush1.bf16.msra.mxu1 %v4305_v62 }
 0x302   :  { %3049 = vmatprep.mubr.bf16.mxu1 %v5431_v54  ;;  %3019 = vmatprep.subr.bf16.mxu1 %v4310_v63  ;;  %v4314_v54 = vld [vmem:[%s5799_s5 + $0x438] ss:$28 sps:$4 sm:$0xff]  }
 0x305   :  { %3020 = vmatpush1.bf16.msra.mxu1 %v4308_v28 }
 0x306   :  { %3021 = vmatprep.subr.bf16.mxu1 %v4313_v0 }
 0x309   :  { %3022 = vmatpush1.bf16.msra.mxu1 %v4311_v1 }
 0x30a   :  { %3023 = vmatprep.subr.bf16.mxu1 %v4316_v27 }
 0x30d   :  { %3024 = vmatpush1.bf16.msra.mxu1 %v4314_v54 }
 0x30e   :  { %3025 = vmatprep.subr.bf16.mxu1 %v4319_v2 }
 0x311   :  { %3026 = vmatpush1.bf16.msra.mxu1 %v4317_v3 }
 0x312   :  { %3027 = vmatprep.subr.bf16.mxu1 %v4322_v4 }
 0x315   :  { %3028 = vmatpush1.bf16.msra.mxu1 %v4320_v5 }
 0x316   :  { %3029 = vmatprep.subr.bf16.mxu1 %v4325_v6 }
 0x319   :  { %3030 = vmatpush1.bf16.msra.mxu1 %v4323_v7 }
 0x31a   :  { %3031 = vmatprep.subr.bf16.mxu1 %v4328_v8 }
 0x31d   :  { %3032 = vmatpush1.bf16.msra.mxu1 %v4326_v9 }
 0x31e   :  { %3033 = vmatprep.subr.bf16.mxu1 %v4331_v10 }
 0x321   :  { %3034 = vmatpush1.bf16.msra.mxu1 %v4329_v11 }
 0x322   :  { %3035 = vmatprep.subr.bf16.mxu1 %v4334_v13 }
 0x325   :  { %3036 = vmatpush1.bf16.msra.mxu1 %v4332_v14 }
 0x326   :  { %3037 = vmatprep.subr.bf16.mxu1 %v4337_v15 }
 0x329   :  { %3038 = vmatpush1.bf16.msra.mxu1 %v4335_v16 }
 0x32a   :  { %3039 = vmatprep.subr.bf16.mxu1 %v4340_v17 }
 0x32d   :  { %3040 = vmatpush1.bf16.msra.mxu1 %v4338_v18 }
 0x32e   :  { %3041 = vmatprep.subr.bf16.mxu1 %v4343_v19 }
 0x331   :  { %3042 = vmatpush1.bf16.msra.mxu1 %v4341_v20 }
 0x332   :  { %3043 = vmatprep.subr.bf16.mxu1 %v4346_v23 }
 0x335   :  { %3044 = vmatpush1.bf16.msra.mxu1 %v4344_v24 }
 0x336   :  { %3045 = vmatprep.subr.bf16.mxu1 %v4349_v25 }
 0x339   :  { %3046 = vmatpush1.bf16.msra.mxu1 %v4347_v26 }
 0x33a   :  { %3047 = vmatprep.subr.bf16.mxu1 %v4352_v29 }
 0x33d   :  { %3048 = vmatpush1.bf16.msra.mxu1 %v4350_v30 }
 0x340   :  { %3050 = vmatmul.mubr.bf16.vlgmr.msra.gmra.mrb[16].mxu1 %v5429_v53 }
 0x393   :  { %v2879_v53 = vpop.f32.mrb[12].mxu1  ;;  %v2965_v36 = vpop.f32.mrb[4].mxu0 }
 0x394   :  { %v5742_v12 = vadd.f32 %v2879_v53, %v1618_v32  ;;  %v5744_v38 = vadd.f32 %v2965_v36, %v1626_v33  ;;  %v2881_v39 = vpop.f32.mrb[13].mxu1  ;;  %v2967_v41 = vpop.f32.mrb[5].mxu0 }
 0x395   :  { %v5746_v40 = vadd.f32 %v2881_v39, %v1622_v34  ;;  %v5748_v42 = vadd.f32 %v2967_v41, %v1630_v35  ;;  %v2883_v21 = vpop.f32.mrb[14].mxu1  ;;  %v2969_v44 = vpop.f32.mrb[6].mxu0 }
 0x396   :  { %v3142_v43 = vand.u32 2147483647, %v5742_v12  ;;  %v3144_v45 = vand.u32 2147483647, %v5744_v38  ;;  %v5754_v49 = vadd.f32 %v2883_v21, %v1618_v32  ;;  %v5756_v50 = vadd.f32 %v2969_v44, %v1626_v33  ;;  %v2885_v51 = vpop.f32.mrb[15].mxu1  ;;  %v2971_v52 = vpop.f32.mrb[7].mxu0 }
 0x397   :  { %v3143_v22 = vand.u32 2147483647, %v5746_v40  ;;  %v3145_v46 = vand.u32 2147483647, %v5748_v42  ;;  %v5758_v57 = vadd.f32 %v2885_v51, %v1622_v34  ;;  %v5760_v58 = vadd.f32 %v2971_v52, %v1630_v35 }
 0x398   :  { %v3156_v47 = vsub.f32 0.0, %v3142_v43  ;;  %v3158_v48 = vsub.f32 0.0, %v3144_v45  ;;  %v3149_v61 = vand.u32 2147483647, %v5754_v49  ;;  %v3151_v0 = vand.u32 2147483647, %v5756_v50 }
 0x399   :  { %v3157_v55 = vsub.f32 0.0, %v3143_v22  ;;  %v3159_v56 = vsub.f32 0.0, %v3145_v46  ;;  %v3150_v1 = vand.u32 2147483647, %v5758_v57  ;;  %v3152_v27 = vand.u32 2147483647, %v5760_v58 }
 0x39a   :  { %v3170_v59 = vmul.f32 1.442695, %v3156_v47  ;;  %v3174_v60 = vmul.f32 1.442695, %v3158_v48  ;;  %v3163_v28 = vsub.f32 0.0, %v3149_v61  ;;  %v3165_v2 = vsub.f32 0.0, %v3151_v0 }
 0x39b   :  { %v3172_v62 = vmul.f32 1.442695, %v3157_v55  ;;  %v3176_v63 = vmul.f32 1.442695, %v3159_v56  ;;  %v3164_v3 = vsub.f32 0.0, %v3150_v1  ;;  %v3166_v4 = vsub.f32 0.0, %v3152_v27 }
 0x39c   :  { %4353 = vpow2.f32 %v3170_v59  ;;  %v3184_v54 = vmul.f32 1.442695, %v3163_v28  ;;  %v3188_v5 = vmul.f32 1.442695, %v3165_v2  ;;  %vm3226_vm1 = vcmp.ge.f32.partialorder %v5742_v12, 0.0 }
 0x39d   :  { %4355 = vpow2.f32 %v3174_v60  ;;  %v3186_v6 = vmul.f32 1.442695, %v3164_v3  ;;  %v3190_v7 = vmul.f32 1.442695, %v3166_v4  ;;  %vm3228_vm2 = vcmp.ge.f32.partialorder %v5744_v38, 0.0 }
 0x39e   :  { %4357 = vpow2.f32 %v3172_v62  ;;  %vm3227_vm3 = vcmp.ge.f32.partialorder %v5746_v40, 0.0  ;;  %vm3229_vm4 = vcmp.ge.f32.partialorder %v5748_v42, 0.0  ;;  %vm3233_vm5 = vcmp.ge.f32.partialorder %v5754_v49, 0.0 }
 0x39f   :  { %4359 = vpow2.f32 %v3176_v63  ;;  %vm3235_vm6 = vcmp.ge.f32.partialorder %v5756_v50, 0.0  ;;  %vm3234_vm7 = vcmp.ge.f32.partialorder %v5758_v57, 0.0  ;;  %vm3236_vm8 = vcmp.ge.f32.partialorder %v5760_v58, 0.0 }
 0x3a0   :  { %4361 = vpow2.f32 %v3184_v54  ;;  %v1641_v49 = vsub.s32 6, %v4963_v37 }
 0x3a1   :  { %4363 = vpow2.f32 %v3188_v5 }
 0x3a2   :  { %4365 = vpow2.f32 %v3186_v6  ;;  %v1642_v63 = vrot.slane %v5730_v31, %v1641_v49 }
 0x3a3   :  { %4367 = vpow2.f32 %v3190_v7 }
 0x3a6   :  { %v4354_v8 = vpop.eup %4353 }
 0x3a7   :  { %v4356_v9 = vpop.eup %4355  ;;  %v3198_v10 = vadd.f32 1.0, %v4354_v8 }
 0x3a8   :  { %v4358_v11 = vpop.eup %4357  ;;  %v3200_v13 = vadd.f32 1.0, %v4356_v9 }
 0x3a9   :  { %v4360_v14 = vpop.eup %4359  ;;  %4369 = vrcp.f32 %v3198_v10  ;;  %v3199_v15 = vadd.f32 1.0, %v4358_v11 }
 0x3aa   :  { %v4362_v16 = vpop.eup %4361  ;;  %4371 = vrcp.f32 %v3200_v13  ;;  %v3201_v17 = vadd.f32 1.0, %v4360_v14 }
 0x3ab   :  { %4373 = vrcp.f32 %v3199_v15  ;;  %v3205_v18 = vadd.f32 1.0, %v4362_v16  ;;  %v4364_v19 = vpop.eup %4363 }
 0x3ac   :  { %4375 = vrcp.f32 %v3201_v17  ;;  %v4366_v20 = vpop.eup %4365  ;;  %v3207_v23 = vadd.f32 1.0, %v4364_v19 }
 0x3ad   :  { %4377 = vrcp.f32 %v3205_v18  ;;  %v4368_v24 = vpop.eup %4367  ;;  %v3206_v25 = vadd.f32 1.0, %v4366_v20 }
 0x3ae   :  { %4379 = vrcp.f32 %v3207_v23  ;;  %v3208_v26 = vadd.f32 1.0, %v4368_v24  ;;  %v1633_v23 = vsub.s32 4, %v4963_v37  ;;  %v1637_v24 = vsub.s32 5, %v4963_v37 }
 0x3af   :  { %4381 = vrcp.f32 %v3206_v25 }
 0x3b0   :  { %4383 = vrcp.f32 %v3208_v26  ;;  %v1634_v25 = vrot.slane %v5730_v31, %v1633_v23  ;;  %v1638_v26 = vrot.slane %v5730_v31, %v1637_v24 }
 0x3b3   :  { %v4370_v29 = vpop.eup %4369 }
 0x3b4   :  { %v4372_v30 = vpop.eup %4371  ;;  %v3240_v32 = vsub.f32 1.0, %v4370_v29  ;;  %v3708_v33 = vpop.f32.mrb[8].mxu0 }
 0x3b5   :  { %v4374_v34 = vpop.eup %4373  ;;  %v3242_v35 = vsub.f32 1.0, %v4372_v30  ;;  %v3709_v53 = vpop.f32.mrb[9].mxu0 }
 0x3b6   :  { %v4376_v36 = vpop.eup %4375  ;;  %v3254_v39 = vsel %vm3226_vm1, %v4370_v29, %v3240_v32  ;;  %v3241_v41 = vsub.f32 1.0, %v4374_v34  ;;  %v3710_v21 = vadd.f32 %v3709_v53, %v3708_v33  ;;  %v3711_v44 = vpop.f32.mrb[10].mxu0 }
 0x3b7   :  { %v4378_v43 = vpop.eup %4377  ;;  %3268 = vst [vmem:[#allocation2] sm:$0xff] %v3254_v39  ;;  %v3256_v45 = vsel %vm3228_vm2, %v4372_v30, %v3242_v35  ;;  %v3243_v22 = vsub.f32 1.0, %v4376_v36  ;;  %v3712_v46 = vpop.f32.mrb[11].mxu0 }
 0x3b8   :  { %3270 = vst [vmem:[#allocation2 + $0x10] sm:$0xff] %v3256_v45  ;;  %v3255_v47 = vsel %vm3227_vm3, %v4374_v34, %v3241_v41  ;;  %v3247_v12 = vsub.f32 1.0, %v4378_v43  ;;  %v3713_v48 = vadd.f32 %v3712_v46, %v3711_v44  ;;  %v4380_v51 = vpop.eup %4379  ;;  %v3095_v1 = vadd.f32 %v3710_v21, %v1642_v63 }
 0x3b9   :  { %3269 = vst [vmem:[#allocation2 + $0x8] sm:$0xff] %v3255_v47  ;;  %v3257_v52 = vsel %vm3229_vm4, %v4376_v36, %v3243_v22  ;;  %v4382_v38 = vpop.eup %4381  ;;  %v3249_v56 = vsub.f32 1.0, %v4380_v51 }
 0x3ba   :  { %3271 = vst [vmem:[#allocation2 + $0x18] sm:$0xff] %v3257_v52  ;;  %v3261_v55 = vsel %vm3233_vm5, %v4378_v43, %v3247_v12  ;;  %v4384_v59 = vpop.eup %4383  ;;  %v3248_v40 = vsub.f32 1.0, %v4382_v38  ;;  %v3098_v2 = vadd.f32 %v3713_v48, %v1642_v63 }
 0x3bb   :  { %3275 = vst [vmem:[#allocation2 + $0x38] sm:$0xff] %v3261_v55  ;;  %v3263_v60 = vsel %vm3235_vm6, %v4380_v51, %v3249_v56  ;;  %v3250_v42 = vsub.f32 1.0, %v4384_v59 }
 0x3bc   :  { %3277 = vst [vmem:[#allocation2 + $0x48] sm:$0xff] %v3263_v60  ;;  %v3262_v61 = vsel %vm3234_vm7, %v4382_v38, %v3248_v40 }
 0x3bd   :  { %3276 = vst [vmem:[#allocation2 + $0x40] sm:$0xff] %v3262_v61  ;;  %v3264_v62 = vsel %vm3236_vm8, %v4384_v59, %v3250_v42 }
 0x3be   :  { %3278 = vst [vmem:[#allocation2 + $0x50] sm:$0xff] %v3264_v62 }
 0x3d4   :  { %v3730_v28 = vpop.f32.mrb[12].mxu0 }
 0x3d5   :  { %v3731_v0 = vpop.f32.mrb[13].mxu0 }
 0x3d6   :  { %v3732_v50 = vadd.f32 %v3731_v0, %v3730_v28  ;;  %v3733_v27 = vpop.f32.mrb[14].mxu0 }
 0x3d7   :  { %v3734_v54 = vpop.f32.mrb[15].mxu0 }
 0x3d8   :  { %v3136_v57 = vadd.f32 %v3732_v50, %v3095_v1  ;;  %v3735_v3 = vadd.f32 %v3734_v54, %v3733_v27 }
 0x3da   :  { %v3148_v4 = vand.u32 2147483647, %v3136_v57  ;;  %v3139_v5 = vadd.f32 %v3735_v3, %v3098_v2  ;;  %vm3232_vm9 = vcmp.ge.f32.partialorder %v3136_v57, 0.0 }
 0x3dc   :  { %v3162_v6 = vsub.f32 0.0, %v3148_v4  ;;  %v3155_v58 = vand.u32 2147483647, %v3139_v5  ;;  %vm3239_vm10 = vcmp.ge.f32.partialorder %v3139_v5, 0.0 }
 0x3de   :  { %v3182_v7 = vmul.f32 1.442695, %v3162_v6  ;;  %v3169_v8 = vsub.f32 0.0, %v3155_v58 }
 0x3e0   :  { %4385 = vpow2.f32 %v3182_v7  ;;  %v3196_v9 = vmul.f32 1.442695, %v3169_v8 }
 0x3e2   :  { %4387 = vpow2.f32 %v3196_v9 }
 0x3ea   :  { %v4386_v10 = vpop.eup %4385 }
 0x3eb   :  { %v3204_v11 = vadd.f32 1.0, %v4386_v10 }
 0x3ec   :  { %v4388_v13 = vpop.eup %4387 }
 0x3ed   :  { %4389 = vrcp.f32 %v3204_v11  ;;  %v3211_v14 = vadd.f32 1.0, %v4388_v13 }
 0x3ef   :  { %4391 = vrcp.f32 %v3211_v14 }
 0x3f7   :  { %v4390_v15 = vpop.eup %4389 }
 0x3f8   :  { %v3246_v16 = vsub.f32 1.0, %v4390_v15 }
 0x3f9   :  { %v4392_v17 = vpop.eup %4391 }
 0x3fa   :  { %v3260_v18 = vsel %vm3232_vm9, %v4390_v15, %v3246_v16  ;;  %v3253_v19 = vsub.f32 1.0, %v4392_v17 }
 0x3fb   :  { %3274 = vst.msk [vmem:[#allocation2 + $0x30] sm:$0xff] %vm671_vm0, %v3260_v18 }
 0x3fc   :  { %v3267_v20 = vsel %vm3239_vm10, %v4392_v17, %v3253_v19 }
 0x3fd   :  { %3281 = vst.msk [vmem:[#allocation2 + $0x68] sm:$0xff] %vm671_vm0, %v3267_v20 }
 0x413   :  { %v3051_v29 = vpop.f32.mrb[16].mxu1 }
 0x414   :  { %v3752_v30 = vadd.f32 %v3051_v29, %v1634_v25  ;;  %v3053_v32 = vpop.f32.mrb[17].mxu1 }
 0x415   :  { %v3753_v33 = vadd.f32 %v3053_v32, %v1638_v26  ;;  %v3055_v34 = vpop.f32.mrb[18].mxu1 }
 0x416   :  { %v3146_v35 = vand.u32 2147483647, %v3752_v30  ;;  %v3754_v53 = vadd.f32 %v3055_v34, %v1634_v25  ;;  %v3057_v36 = vpop.f32.mrb[19].mxu1  ;;  %vm3230_vm11 = vcmp.ge.f32.partialorder %v3752_v30, 0.0 }
 0x417   :  { %v3147_v39 = vand.u32 2147483647, %v3753_v33  ;;  %v3755_v41 = vadd.f32 %v3057_v36, %v1638_v26  ;;  %vm3231_vm12 = vcmp.ge.f32.partialorder %v3753_v33, 0.0 }
 0x418   :  { %v3160_v21 = vsub.f32 0.0, %v3146_v35  ;;  %v3153_v44 = vand.u32 2147483647, %v3754_v53  ;;  %vm3237_vm13 = vcmp.ge.f32.partialorder %v3754_v53, 0.0 }
 0x419   :  { %v3161_v43 = vsub.f32 0.0, %v3147_v39  ;;  %v3154_v45 = vand.u32 2147483647, %v3755_v41  ;;  %vm3238_vm14 = vcmp.ge.f32.partialorder %v3755_v41, 0.0 }
 0x41a   :  { %v3178_v22 = vmul.f32 1.442695, %v3160_v21  ;;  %v3167_v37 = vsub.f32 0.0, %v3153_v44 }
 0x41b   :  { %v3180_v46 = vmul.f32 1.442695, %v3161_v43  ;;  %v3168_v47 = vsub.f32 0.0, %v3154_v45 }
 0x41c   :  { %4393 = vpow2.f32 %v3178_v22  ;;  %v3192_v31 = vmul.f32 1.442695, %v3167_v37 }
 0x41d   :  { %4395 = vpow2.f32 %v3180_v46  ;;  %v3194_v12 = vmul.f32 1.442695, %v3168_v47 }
 0x41e   :  { %4397 = vpow2.f32 %v3192_v31 }
 0x41f   :  { %4399 = vpow2.f32 %v3194_v12 }
 0x426   :  { %v4394_v48 = vpop.eup %4393 }
 0x427   :  { %v4396_v51 = vpop.eup %4395  ;;  %v3202_v52 = vadd.f32 1.0, %v4394_v48 }
 0x428   :  { %v4398_v38 = vpop.eup %4397  ;;  %v3203_v55 = vadd.f32 1.0, %v4396_v51 }
 0x429   :  { %v4400_v56 = vpop.eup %4399  ;;  %4401 = vrcp.f32 %v3202_v52  ;;  %v3209_v59 = vadd.f32 1.0, %v4398_v38 }
 0x42a   :  { %4403 = vrcp.f32 %v3203_v55  ;;  %v3210_v40 = vadd.f32 1.0, %v4400_v56 }
 0x42b   :  { %4405 = vrcp.f32 %v3209_v59 }
 0x42c   :  { %4407 = vrcp.f32 %v3210_v40 }
 0x433   :  { %v4402_v60 = vpop.eup %4401 }
 0x434   :  { %v4404_v42 = vpop.eup %4403  ;;  %v3244_v61 = vsub.f32 1.0, %v4402_v60 }
 0x435   :  { %v4406_v62 = vpop.eup %4405  ;;  %v3245_v49 = vsub.f32 1.0, %v4404_v42 }
 0x436   :  { %v4408_v63 = vpop.eup %4407  ;;  %v3258_v28 = vsel %vm3230_vm11, %v4402_v60, %v3244_v61  ;;  %v3251_v0 = vsub.f32 1.0, %v4406_v62 }
 0x437   :  { %3272 = vst [vmem:[#allocation2 + $0x20] sm:$0xff] %v3258_v28  ;;  %v3259_v1 = vsel %vm3231_vm12, %v4404_v42, %v3245_v49  ;;  %v3252_v50 = vsub.f32 1.0, %v4408_v63 }
 0x438   :  { %3273 = vst [vmem:[#allocation2 + $0x28] sm:$0xff] %v3259_v1  ;;  %v3265_v27 = vsel %vm3237_vm13, %v4406_v62, %v3251_v0 }
 0x439   :  { %3279 = vst [vmem:[#allocation2 + $0x58] sm:$0xff] %v3265_v27  ;;  %v3266_v54 = vsel %vm3238_vm14, %v4408_v63, %v3252_v50 }
 0x43a   :  { %3280 = vst [vmem:[#allocation2 + $0x60] sm:$0xff] %v3266_v54 }
 0x43b   :  { %3286 = vsyncadd [#allocation3], 896  ;;  %s4434_s5 = smov [#allocation2]  }
 0x43c   :  { %s3287_s6 = sshll.u32 %s4434_s5, 4  ;;  %s3288_s6 = int_to_ptr.vmem [resolvable:$true] %s3287_s6 }
 0x43d   :  { %s4409_s20 = scalar_lea.vmem %s3288_s6, 896  ;;  %s4413_s3 = scalar_lea.vmem %s3288_s6, 1792 }
 0x43e   :  { %p4410_p0 = scmp.ne.s32.totalorder %s3288_s6, %s4409_s20  ;;  %p4414_p1 = scmp.lt.s32.totalorder %s3288_s6, %s3288_s6 }
 0x43f   :  { %p4415_p2 = scmp.lt.s32.totalorder %s4413_s3, %s4409_s20 }
 0x441   :  { %p4416_p3 = por %p4415_p2, %p4414_p1 }
 0x443   :  { %p4417_p4 = pnand %p4416_p3, %p4410_p0 }
 0x445   :  { %4420 = shalt.err (!%p4417_p4)
}
 0x446   :  { %s4421_s23 = scalar_lea.hbm %s5801_s7, 896 }
 0x447   :  { %p4422_p5 = scmp.ne.s32.totalorder %s5801_s7, %s4421_s23  ;;  %p4425_p6 = scmp.lt.u32.totalorder %s4421_s23, %s5801_s7 }
 0x449   :  { %p4427_p7 = pnand %p4425_p6, %p4422_p5 }
 0x44b   :  { %4430 = shalt.err (!%p4427_p7)
}
 0x44c   :  { %s4435_s27 = smov 896   ;;  %s4436_s28 = smov 56  }
 0x44d   :  { %3293 = dma.vmem_to_hbm [thread:$0]  %s3288_s6, 896, %s5801_s7, [#allocation3], %s4435_s27, %s4435_s27, %s4436_s28  }
 0x44e   :  { %4431 = dma.done.wait [#allocation3], 1792  }
 0x44f   :  { %4432 = vsyncadd [#allocation3], 4294965504 }
 0x450   :  { %3297 = vsyncpa [#allocation3], 1 }

</bundles_post_ra>
